<compile_context>
chip_gen: v7x
topology: tpu7x:2x2x1
jax: 0.10.0
libtpu: 0.0.40
codegen_flags: <defaults>
</compile_context>

<pallas_src>
import functools

import jax
import jax.numpy as jnp
import numpy as np
from jax.experimental import pallas as pl
from jax.experimental.pallas import tpu as pltpu


# ------------------------------ fused kernel -------------------------------

def fused_inverted_residual_kernel(x_ref, w1_ref, b1_ref, wm_ref, b2_ref,
                                   w3_ref, b3_ref, o_ref, *, W, NM):
    """Expand(1x1)+BN+ReLU6 -> 3x3 depthwise+BN+ReLU6 -> project(1x1)+BN
    + identity residual, fully fused, whole batch in one step.

    x_ref  : (Cin,  NM)      input, NM = N*H*W on the lane axis
    w1_ref : (Chid, Cin)     1x1 expand weights, BN1 scale folded in
    b1_ref : (Chid, 1)       BN1 shift
    wm_ref : (9, Chid, NM)   per-tap depthwise-weight x boundary-mask table
                             (BN2 scale folded into the weights)
    b2_ref : (Chid, 1)       BN2 shift
    w3_ref : (Cout, Chid)    1x1 project weights, BN3 scale folded in
    b3_ref : (Cout, 1)       BN3 shift
    o_ref  : (Cout, NM)
    """
    x = x_ref[...]                                              # (Cin, NM)

    # ---- 1x1 expand + BN + ReLU6 (hidden activation stays on-chip) ----
    h = jnp.dot(w1_ref[...], x, preferred_element_type=jnp.float32)
    h = jnp.clip(h + b1_ref[...], 0.0, 6.0)                     # (Chid, NM)

    # ---- 3x3 depthwise (stride 1, pad 1) + BN + ReLU6 via lane rolls ----
    # Center tap first: its mask is all ones, so wm[4] is just the weight.
    acc = h * wm_ref[4]                                         # (Chid, NM)
    for dy in (-1, 0, 1):
        for dx in (-1, 0, 1):
            if dy == 0 and dx == 0:
                continue
            d = dy * W + dx                  # flat source offset
            tap = 3 * (dy + 1) + (dx + 1)
            # shifted[m] = h[(m + d) mod NM]; wrap-around and cross-image
            # leakage are killed by the zeros baked into wm_ref[tap].
            shifted = pltpu.roll(h, (-d) % NM, axis=1)
            acc = acc + shifted * wm_ref[tap]
    h2 = jnp.clip(acc + b2_ref[...], 0.0, 6.0)                  # (Chid, NM)

    # ---- 1x1 project + BN + identity residual ----
    y = jnp.dot(w3_ref[...], h2, preferred_element_type=jnp.float32)
    o_ref[...] = y + b3_ref[...] + x                            # (Cout, NM)


# -------------------------------- wrapper -----------------------------------

def _dw_boundary_masks(H, W):
    """(9, H*W) float32 0/1 masks: tap (dy,dx) valid at output position."""
    M = H * W
    row = np.arange(M) // W
    col = np.arange(M) % W
    masks = np.zeros((9, M), np.float32)
    for dy in (-1, 0, 1):
        for dx in (-1, 0, 1):
            tap = 3 * (dy + 1) + (dx + 1)
            ok = ((row + dy >= 0) & (row + dy < H) &
                  (col + dx >= 0) & (col + dx < W))
            masks[tap] = ok
    return masks


def inverted_residual_forward(x_nchw, folded):
    """InvertedResidual forward, stride=1 identity configuration."""
    # TODO(synk): stride=2 / expand_ratio==1 / non-identity (inp != oup)
    # variants of the PyTorch module are not implemented in this kernel.
    N, Cin, H, W = x_nchw.shape
    M = H * W
    NM = N * M
    Chid = folded["w1s"].shape[0]
    Cout = folded["w3s"].shape[0]
    assert Cin == Cout, "identity residual path requires inp == oup"

    # Fold batch onto the lane axis: (N, Cin, H, W) -> (Cin, N*H*W).
    x2 = jnp.transpose(x_nchw.reshape(N, Cin, M), (1, 0, 2)).reshape(Cin, NM)

    # Precombined per-tap (depthwise weight x boundary mask) table, tiled
    # across the folded batch so cross-image taps are zeroed.
    masks_nm = jnp.asarray(np.tile(_dw_boundary_masks(H, W), (1, N)))  # (9,NM)
    wm = folded["wdws"].T[:, :, None] * masks_nm[:, None, :]  # (9, Chid, NM)

    flops = 2 * NM * (Chid * Cin + 9 * Chid + Chid * Cout)
    bytes_accessed = 4 * (Cin * NM + Chid * Cin + Chid + 9 * Chid * NM
                          + Chid + Cout * Chid + Cout + Cout * NM)
    cost = pl.CostEstimate(flops=int(flops), transcendentals=0,
                           bytes_accessed=int(bytes_accessed))

    kernel = functools.partial(fused_inverted_residual_kernel, W=W, NM=NM)
    out2 = pl.pallas_call(
        kernel,
        out_shape=jax.ShapeDtypeStruct((Cout, NM), jnp.float32),
        grid_spec=pltpu.PrefetchScalarGridSpec(
            num_scalar_prefetch=0,
            grid=(1,),
            in_specs=[
                pl.BlockSpec((Cin, NM), lambda i: (0, 0)),
                pl.BlockSpec((Chid, Cin), lambda i: (0, 0)),
                pl.BlockSpec((Chid, 1), lambda i: (0, 0)),
                pl.BlockSpec((9, Chid, NM), lambda i: (0, 0, 0)),
                pl.BlockSpec((Chid, 1), lambda i: (0, 0)),
                pl.BlockSpec((Cout, Chid), lambda i: (0, 0)),
                pl.BlockSpec((Cout, 1), lambda i: (0, 0)),
            ],
            out_specs=pl.BlockSpec((Cout, NM), lambda i: (0, 0)),
        ),
        compiler_params=pltpu.CompilerParams(
            dimension_semantics=("arbitrary",)),
        cost_estimate=cost,
    )(x2, folded["w1s"], folded["b1"], wm, folded["b2"],
      folded["w3s"], folded["b3"])

    # (Cout, N*M) -> (N, Cout, H, W)
    return jnp.transpose(out2.reshape(Cout, N, H, W), (1, 0, 2, 3))


# --------------------------- parameter creation -----------------------------

def make_params(inp, oup, expand_ratio, key):
    hidden = int(round(inp * expand_ratio))
    k = jax.random.split(key, 6)

    def bn_params(kk, c):
        k1, k2, k3, k4 = jax.random.split(kk, 4)
        gamma = 1.0 + 0.1 * jax.random.normal(k1, (c,), jnp.float32)
        beta = 0.1 * jax.random.normal(k2, (c,), jnp.float32)
        mean = 0.1 * jax.random.normal(k3, (c,), jnp.float32)
        var = 1.0 + 0.1 * jax.random.uniform(k4, (c,), jnp.float32)
        return gamma, beta, mean, var

    return dict(
        w1=0.1 * jax.random.normal(k[0], (hidden, inp), jnp.float32),
        w_dw=0.1 * jax.random.normal(k[1], (3, 3, hidden), jnp.float32),
        w3=0.1 * jax.random.normal(k[2], (oup, hidden), jnp.float32),
        bn1=bn_params(k[3], hidden),
        bn2=bn_params(k[4], hidden),
        bn3=bn_params(k[5], oup),
    )


def _fold_bn(gamma, beta, mean, var, eps=1e-5):
    scale = gamma / jnp.sqrt(var + eps)
    shift = beta - mean * scale
    return scale, shift


def fold_params(p):
    """Fold eval-mode BN scales into conv weights; keep only the shifts."""
    s1, b1 = _fold_bn(*p["bn1"])
    s2, b2 = _fold_bn(*p["bn2"])
    s3, b3 = _fold_bn(*p["bn3"])
    chid = p["w1"].shape[0]
    return dict(
        w1s=p["w1"] * s1[:, None],                        # (Chid, Cin)
        b1=b1[:, None],                                   # (Chid, 1)
        wdws=p["w_dw"].reshape(9, chid).T * s2[:, None],  # (Chid, 9)
        b2=b2[:, None],                                   # (Chid, 1)
        w3s=p["w3"] * s3[:, None],                        # (Cout, Chid)
        b3=b3[:, None],                                   # (Cout, 1)
    )


# ---------------------------- pure-JAX reference ----------------------------

def reference_forward(x_nchw, p, eps=1e-5):
    N, Cin, H, W = x_nchw.shape
    x = jnp.transpose(x_nchw, (0, 2, 3, 1))               # NHWC

    def bn(v, stats):
        gamma, beta, mean, var = stats
        return (v - mean) / jnp.sqrt(var + eps) * gamma + beta

    h = jnp.einsum("nhwc,dc->nhwd", x, p["w1"])
    h = jnp.clip(bn(h, p["bn1"]), 0.0, 6.0)
    hp = jnp.pad(h, ((0, 0), (1, 1), (1, 1), (0, 0)))
    acc = jnp.zeros_like(h)
    for dy in range(3):
        for dx in range(3):
            acc = acc + hp[:, dy:dy + H, dx:dx + W, :] * p["w_dw"][dy, dx]
    h2 = jnp.clip(bn(acc, p["bn2"]), 0.0, 6.0)
    o = jnp.einsum("nhwc,dc->nhwd", h2, p["w3"])
    o = bn(o, p["bn3"]) + x
    return jnp.transpose(o, (0, 3, 1, 2))


# ---------------------------------- main ------------------------------------

if __name__ == "__main__":
    key = jax.random.PRNGKey(0)
    kx, kp = jax.random.split(key)

    N, C, H, W = 2, 4, 16, 16            # NCHW, matching the PyTorch module
    inp, oup, stride, expand_ratio = C, C, 1, 6
    x = jax.random.normal(kx, (N, C, H, W), jnp.float32)

    raw = make_params(inp, oup, expand_ratio, kp)
    folded = fold_params(raw)

    out = inverted_residual_forward(x, folded)
    out = jax.block_until_ready(out)

    ref = jax.block_until_ready(reference_forward(x, raw))
    assert out.shape == (N, oup, H, W)
    np.testing.assert_allclose(np.asarray(out), np.asarray(ref),
                               rtol=1e-4, atol=1e-4)
    print("KERNEL_OK")
</pallas_src>

<mosaic_0001>
module attributes {stable_mosaic.version = 11 : i64} {
  func.func @fused_inverted_residual_kernel(%arg0: i32, %arg1: memref<4x512xf32, #tpu.memory_space<vmem>>, %arg2: memref<24x4xf32, #tpu.memory_space<vmem>>, %arg3: memref<24x1xf32, #tpu.memory_space<vmem>>, %arg4: memref<9x24x512xf32, #tpu.memory_space<vmem>>, %arg5: memref<24x1xf32, #tpu.memory_space<vmem>>, %arg6: memref<4x24xf32, #tpu.memory_space<vmem>>, %arg7: memref<4x1xf32, #tpu.memory_space<vmem>>, %arg8: memref<4x512xf32, #tpu.memory_space<vmem>>) attributes {dimension_semantics = [#tpu.dimension_semantics<arbitrary>], iteration_bounds = array<i64: 1>, scalar_prefetch = 0 : i64, scratch_operands = 0 : i64, tpu.core_type = #tpu.core_type<tc>, window_params = [{pipeline_mode = #tpu.pipeline_mode<synchronous>, transform_indices = @transform_0, window_bounds = array<i64: 4, 512>}, {pipeline_mode = #tpu.pipeline_mode<synchronous>, transform_indices = @transform_1, window_bounds = array<i64: 24, 4>}, {pipeline_mode = #tpu.pipeline_mode<synchronous>, transform_indices = @transform_2, window_bounds = array<i64: 24, 1>}, {pipeline_mode = #tpu.pipeline_mode<synchronous>, transform_indices = @transform_3, window_bounds = array<i64: 9, 24, 512>}, {pipeline_mode = #tpu.pipeline_mode<synchronous>, transform_indices = @transform_4, window_bounds = array<i64: 24, 1>}, {pipeline_mode = #tpu.pipeline_mode<synchronous>, transform_indices = @transform_5, window_bounds = array<i64: 4, 24>}, {pipeline_mode = #tpu.pipeline_mode<synchronous>, transform_indices = @transform_6, window_bounds = array<i64: 4, 1>}, {pipeline_mode = #tpu.pipeline_mode<synchronous>, transform_indices = @transform_7, window_bounds = array<i64: 4, 512>}]} {
    %c0 = arith.constant 0 : index
    %c0_0 = arith.constant 0 : index
    %0 = vector.load %arg1[%c0, %c0_0] : memref<4x512xf32, #tpu.memory_space<vmem>>, vector<4x512xf32>
    %c0_1 = arith.constant 0 : index
    %c0_2 = arith.constant 0 : index
    %1 = vector.load %arg2[%c0_1, %c0_2] : memref<24x4xf32, #tpu.memory_space<vmem>>, vector<24x4xf32>
    %cst = arith.constant dense<0.000000e+00> : vector<24x512xf32>
    %2 = tpu.matmul %1, %0, %cst {dimension_numbers = #tpu.dot_dimension_numbers<[1], [0], [0], [1], [0, 0, 1, 1], [], []>} : vector<24x4xf32>, vector<4x512xf32>, vector<24x512xf32> -> vector<24x512xf32>
    %c0_3 = arith.constant 0 : index
    %c0_4 = arith.constant 0 : index
    %3 = vector.load %arg3[%c0_3, %c0_4] : memref<24x1xf32, #tpu.memory_space<vmem>>, vector<24x1xf32>
    %4 = vector.broadcast %3 : vector<24x1xf32> to vector<24x512xf32>
    %5 = arith.addf %2, %4 : vector<24x512xf32>
    %cst_5 = arith.constant 0.000000e+00 : f32
    %cst_6 = arith.constant 6.000000e+00 : f32
    %6 = vector.broadcast %cst_5 : f32 to vector<24x512xf32>
    %7 = arith.maximumf %6, %5 : vector<24x512xf32>
    %8 = vector.broadcast %cst_6 : f32 to vector<24x512xf32>
    %9 = arith.minimumf %8, %7 : vector<24x512xf32>
    %c4 = arith.constant 4 : index
    %c0_7 = arith.constant 0 : index
    %c0_8 = arith.constant 0 : index
    %10 = vector.load %arg4[%c4, %c0_7, %c0_8] : memref<9x24x512xf32, #tpu.memory_space<vmem>>, vector<1x24x512xf32>
    %11 = vector.shape_cast %10 : vector<1x24x512xf32> to vector<24x512xf32>
    %12 = arith.mulf %9, %11 : vector<24x512xf32>
    %c17_i32 = arith.constant 17 : i32
    %13 = tpu.dynamic_rotate %9 by %c17_i32 dim 1 : vector<24x512xf32>, i32 -> vector<24x512xf32>
    %c0_9 = arith.constant 0 : index
    %c0_10 = arith.constant 0 : index
    %c0_11 = arith.constant 0 : index
    %14 = vector.load %arg4[%c0_9, %c0_10, %c0_11] : memref<9x24x512xf32, #tpu.memory_space<vmem>>, vector<1x24x512xf32>
    %15 = vector.shape_cast %14 : vector<1x24x512xf32> to vector<24x512xf32>
    %16 = arith.mulf %13, %15 : vector<24x512xf32>
    %17 = arith.addf %12, %16 : vector<24x512xf32>
    %c16_i32 = arith.constant 16 : i32
    %18 = tpu.dynamic_rotate %9 by %c16_i32 dim 1 : vector<24x512xf32>, i32 -> vector<24x512xf32>
    %c1 = arith.constant 1 : index
    %c0_12 = arith.constant 0 : index
    %c0_13 = arith.constant 0 : index
    %19 = vector.load %arg4[%c1, %c0_12, %c0_13] : memref<9x24x512xf32, #tpu.memory_space<vmem>>, vector<1x24x512xf32>
    %20 = vector.shape_cast %19 : vector<1x24x512xf32> to vector<24x512xf32>
    %21 = arith.mulf %18, %20 : vector<24x512xf32>
    %22 = arith.addf %17, %21 : vector<24x512xf32>
    %c15_i32 = arith.constant 15 : i32
    %23 = tpu.dynamic_rotate %9 by %c15_i32 dim 1 : vector<24x512xf32>, i32 -> vector<24x512xf32>
    %c2 = arith.constant 2 : index
    %c0_14 = arith.constant 0 : index
    %c0_15 = arith.constant 0 : index
    %24 = vector.load %arg4[%c2, %c0_14, %c0_15] : memref<9x24x512xf32, #tpu.memory_space<vmem>>, vector<1x24x512xf32>
    %25 = vector.shape_cast %24 : vector<1x24x512xf32> to vector<24x512xf32>
    %26 = arith.mulf %23, %25 : vector<24x512xf32>
    %27 = arith.addf %22, %26 : vector<24x512xf32>
    %c1_i32 = arith.constant 1 : i32
    %28 = tpu.dynamic_rotate %9 by %c1_i32 dim 1 : vector<24x512xf32>, i32 -> vector<24x512xf32>
    %c3 = arith.constant 3 : index
    %c0_16 = arith.constant 0 : index
    %c0_17 = arith.constant 0 : index
    %29 = vector.load %arg4[%c3, %c0_16, %c0_17] : memref<9x24x512xf32, #tpu.memory_space<vmem>>, vector<1x24x512xf32>
    %30 = vector.shape_cast %29 : vector<1x24x512xf32> to vector<24x512xf32>
    %31 = arith.mulf %28, %30 : vector<24x512xf32>
    %32 = arith.addf %27, %31 : vector<24x512xf32>
    %c511_i32 = arith.constant 511 : i32
    %33 = tpu.dynamic_rotate %9 by %c511_i32 dim 1 : vector<24x512xf32>, i32 -> vector<24x512xf32>
    %c5 = arith.constant 5 : index
    %c0_18 = arith.constant 0 : index
    %c0_19 = arith.constant 0 : index
    %34 = vector.load %arg4[%c5, %c0_18, %c0_19] : memref<9x24x512xf32, #tpu.memory_space<vmem>>, vector<1x24x512xf32>
    %35 = vector.shape_cast %34 : vector<1x24x512xf32> to vector<24x512xf32>
    %36 = arith.mulf %33, %35 : vector<24x512xf32>
    %37 = arith.addf %32, %36 : vector<24x512xf32>
    %c497_i32 = arith.constant 497 : i32
    %38 = tpu.dynamic_rotate %9 by %c497_i32 dim 1 : vector<24x512xf32>, i32 -> vector<24x512xf32>
    %c6 = arith.constant 6 : index
    %c0_20 = arith.constant 0 : index
    %c0_21 = arith.constant 0 : index
    %39 = vector.load %arg4[%c6, %c0_20, %c0_21] : memref<9x24x512xf32, #tpu.memory_space<vmem>>, vector<1x24x512xf32>
    %40 = vector.shape_cast %39 : vector<1x24x512xf32> to vector<24x512xf32>
    %41 = arith.mulf %38, %40 : vector<24x512xf32>
    %42 = arith.addf %37, %41 : vector<24x512xf32>
    %c496_i32 = arith.constant 496 : i32
    %43 = tpu.dynamic_rotate %9 by %c496_i32 dim 1 : vector<24x512xf32>, i32 -> vector<24x512xf32>
    %c7 = arith.constant 7 : index
    %c0_22 = arith.constant 0 : index
    %c0_23 = arith.constant 0 : index
    %44 = vector.load %arg4[%c7, %c0_22, %c0_23] : memref<9x24x512xf32, #tpu.memory_space<vmem>>, vector<1x24x512xf32>
    %45 = vector.shape_cast %44 : vector<1x24x512xf32> to vector<24x512xf32>
    %46 = arith.mulf %43, %45 : vector<24x512xf32>
    %47 = arith.addf %42, %46 : vector<24x512xf32>
    %c495_i32 = arith.constant 495 : i32
    %48 = tpu.dynamic_rotate %9 by %c495_i32 dim 1 : vector<24x512xf32>, i32 -> vector<24x512xf32>
    %c8 = arith.constant 8 : index
    %c0_24 = arith.constant 0 : index
    %c0_25 = arith.constant 0 : index
    %49 = vector.load %arg4[%c8, %c0_24, %c0_25] : memref<9x24x512xf32, #tpu.memory_space<vmem>>, vector<1x24x512xf32>
    %50 = vector.shape_cast %49 : vector<1x24x512xf32> to vector<24x512xf32>
    %51 = arith.mulf %48, %50 : vector<24x512xf32>
    %52 = arith.addf %47, %51 : vector<24x512xf32>
    %c0_26 = arith.constant 0 : index
    %c0_27 = arith.constant 0 : index
    %53 = vector.load %arg5[%c0_26, %c0_27] : memref<24x1xf32, #tpu.memory_space<vmem>>, vector<24x1xf32>
    %54 = vector.broadcast %53 : vector<24x1xf32> to vector<24x512xf32>
    %55 = arith.addf %52, %54 : vector<24x512xf32>
    %cst_28 = arith.constant 0.000000e+00 : f32
    %cst_29 = arith.constant 6.000000e+00 : f32
    %56 = vector.broadcast %cst_28 : f32 to vector<24x512xf32>
    %57 = arith.maximumf %56, %55 : vector<24x512xf32>
    %58 = vector.broadcast %cst_29 : f32 to vector<24x512xf32>
    %59 = arith.minimumf %58, %57 : vector<24x512xf32>
    %c0_30 = arith.constant 0 : index
    %c0_31 = arith.constant 0 : index
    %60 = vector.load %arg6[%c0_30, %c0_31] : memref<4x24xf32, #tpu.memory_space<vmem>>, vector<4x24xf32>
    %cst_32 = arith.constant dense<0.000000e+00> : vector<4x512xf32>
    %61 = tpu.matmul %60, %59, %cst_32 {dimension_numbers = #tpu.dot_dimension_numbers<[1], [0], [0], [1], [0, 0, 1, 1], [], []>} : vector<4x24xf32>, vector<24x512xf32>, vector<4x512xf32> -> vector<4x512xf32>
    %c0_33 = arith.constant 0 : index
    %c0_34 = arith.constant 0 : index
    %62 = vector.load %arg7[%c0_33, %c0_34] : memref<4x1xf32, #tpu.memory_space<vmem>>, vector<4x1xf32>
    %63 = vector.broadcast %62 : vector<4x1xf32> to vector<4x512xf32>
    %64 = arith.addf %61, %63 : vector<4x512xf32>
    %65 = arith.addf %64, %0 : vector<4x512xf32>
    %c0_35 = arith.constant 0 : index
    %c0_36 = arith.constant 0 : index
    %66 = vector.load %arg8[%c0_35, %c0_36] : memref<4x512xf32, #tpu.memory_space<vmem>>, vector<4x512xf32>
    tpu.vector_store %arg8[%c0_35, %c0_36], %65 {strides = array<i32>} : memref<4x512xf32, #tpu.memory_space<vmem>>, vector<4x512xf32>,
    return
  }
  func.func @transform_0(%arg0: i32) -> (i32, i32) {
    %c0_i32 = arith.constant 0 : i32
    %c0_i32_0 = arith.constant 0 : i32
    %c0_i32_1 = arith.constant 0 : i32
    return %c0_i32, %c0_i32_0 : i32, i32
  }
  func.func @transform_1(%arg0: i32) -> (i32, i32) {
    %c0_i32 = arith.constant 0 : i32
    %c0_i32_0 = arith.constant 0 : i32
    %c0_i32_1 = arith.constant 0 : i32
    return %c0_i32, %c0_i32_0 : i32, i32
  }
  func.func @transform_2(%arg0: i32) -> (i32, i32) {
    %c0_i32 = arith.constant 0 : i32
    %c0_i32_0 = arith.constant 0 : i32
    %c0_i32_1 = arith.constant 0 : i32
    return %c0_i32, %c0_i32_0 : i32, i32
  }
  func.func @transform_3(%arg0: i32) -> (i32, i32, i32) {
    %c0_i32 = arith.constant 0 : i32
    %c0_i32_0 = arith.constant 0 : i32
    %c0_i32_1 = arith.constant 0 : i32
    %c0_i32_2 = arith.constant 0 : i32
    return %c0_i32, %c0_i32_0, %c0_i32_1 : i32, i32, i32
  }
  func.func @transform_4(%arg0: i32) -> (i32, i32) {
    %c0_i32 = arith.constant 0 : i32
    %c0_i32_0 = arith.constant 0 : i32
    %c0_i32_1 = arith.constant 0 : i32
    return %c0_i32, %c0_i32_0 : i32, i32
  }
  func.func @transform_5(%arg0: i32) -> (i32, i32) {
    %c0_i32 = arith.constant 0 : i32
    %c0_i32_0 = arith.constant 0 : i32
    %c0_i32_1 = arith.constant 0 : i32
    return %c0_i32, %c0_i32_0 : i32, i32
  }
  func.func @transform_6(%arg0: i32) -> (i32, i32) {
    %c0_i32 = arith.constant 0 : i32
    %c0_i32_0 = arith.constant 0 : i32
    %c0_i32_1 = arith.constant 0 : i32
    return %c0_i32, %c0_i32_0 : i32, i32
  }
  func.func @transform_7(%arg0: i32) -> (i32, i32) {
    %c0_i32 = arith.constant 0 : i32
    %c0_i32_0 = arith.constant 0 : i32
    %c0_i32_1 = arith.constant 0 : i32
    return %c0_i32, %c0_i32_0 : i32, i32
  }
}

</mosaic_0001>

<bundles_post_ra>
// kernel: tpu_custom_call.1
= control target key start
LH: loop header
LB: loop body
LE: loop exit
PB: predicated region body
PF: predicated region fallthrough
CT: control target
= control target key end

     0   :  { %12 = vsyncpa [#allocation3], 0  ;;  %s2062_s0 = inlined_call_operand.vmem [shape: f32[4,512], index: 0, kind: input, shape index: {}]   ;;  %s2063_s1 = inlined_call_operand.vmem [shape: f32[24,4], index: 1, kind: input, shape index: {}]   ;;  %s2064_s2 = inlined_call_operand.vmem [shape: f32[24,1], index: 2, kind: input, shape index: {}]   ;;  %s2065_s3 = inlined_call_operand.hbm [shape: f32[9,24,512], index: 3, kind: input, shape index: {}]   ;;  %s2066_s4 = inlined_call_operand.vmem [shape: f32[24,1], index: 4, kind: input, shape index: {}]   ;;  %s2067_s5 = inlined_call_operand.vmem [shape: f32[4,24], index: 5, kind: input, shape index: {}]   ;;  %s2068_s6 = inlined_call_operand.vmem [shape: f32[4,1], index: 6, kind: input, shape index: {}]   ;;  %s2069_s7 = inlined_call_operand.hbm [shape: f32[4,512], index: 7, kind: output, shape index: {}]  }
   0x1   :  { %13 = vsyncpa [#allocation4], 0  ;;  %s1221_s24 = smov [#allocation2]   ;;  %s1173_s28 = scalar_lea.hbm %s2065_s3, 13824 }
   0x2   :  { %s25_s25 = sshll.u32 %s1221_s24, 4  ;;  %p1174_p0 = scmp.ne.s32.totalorder %s2065_s3, %s1173_s28  ;;  %s26_s25 = int_to_ptr.vmem [resolvable:$true] %s25_s25 }
   0x3   :  { %p1177_p1 = scmp.lt.u32.totalorder %s1173_s28, %s2065_s3 }
   0x5   :  { %p1179_p2 = pnand %p1177_p1, %p1174_p0 }
   0x7   :  { %1182 = shalt.err (!%p1179_p2)
}
   0x8   :  { %s1183_s10 = scalar_lea.vmem %s26_s25, 13824  ;;  %p1188_p4 = scmp.lt.s32.totalorder %s26_s25, %s26_s25 }
   0x9   :  { %p1184_p3 = scmp.ne.s32.totalorder %s26_s25, %s1183_s10  ;;  %p1189_p5 = scmp.lt.s32.totalorder %s1183_s10, %s1183_s10 }
   0xb   :  { %p1190_p6 = por %p1189_p5, %p1188_p4 }
   0xd   :  { %p1191_p7 = pnand %p1190_p6, %p1184_p3 }
   0xf   :  { %1194 = shalt.err (!%p1191_p7)
}
  0x10   :  { %s1222_s11 = smov 512   ;;  %s1223_s12 = smov 32  }
  0x11   :  { %31 = dma.hbm_to_vmem [thread:$0]  %s2065_s3, 13824, %s26_s25, [#allocation3], %s1222_s11, %s1222_s11, %s1223_s12  }
  0x12   :  { %1217 = dma.done.wait [#allocation3], 13824  }
  0x13   :  { %1218 = vsyncadd [#allocation3], 4294953472  ;;  %v1224_v0 = vmov 0.0   ;;  %v1225_v1 = vmov 0   ;;  %v41_v2 = vld [vmem:[%s2062_s0] sm:$0xff]  ;;  %vm78_vm0 = vcmask 1043456  }
  0x14   :  { %151 = vmatprep.mubr.f32.mxu0 %v1224_v0  ;;  %234 = vmatprep.mubr.f32.mxu1 %v1224_v0  ;;  %v42_v3 = vld [vmem:[%s2062_s0 + $0x8] sm:$0xff]  ;;  %v1293_v4 = vcombine.high %v41_v2, %v41_v2  ;;  %v46_v6 = vld [vmem:[%s2064_s2] sm:$0xff]  ;;  %vm68_vm1 = vcmask 31744   ;;  %v48_v9 = vld [vmem:[%s2064_s2 + $0x10] sm:$0xff]  ;;  %s1228_s12 = smov 15   ;;  %s1229_s13 = smov 1  }
  0x15   :  { %1167 = vset.pattern.permute.xlu0 %v1225_v1  ;;  %1168 = vset.pattern.permute.xlu1 %v1225_v1  ;;  %v1295_v5 = vcombine.high %v42_v3, %v42_v3  ;;  %v43_v7 = vld [vmem:[%s2063_s1] sm:$0xff]  ;;  %v47_v8 = vld [vmem:[%s2064_s2 + $0x8] sm:$0xff]  ;;  %v45_v13 = vld [vmem:[%s2063_s1 + $0x10] sm:$0xff]  ;;  %s1230_s14 = smov 127   ;;  %s1231_s15 = smov 113   ;;  %vm956_vm10 = vcmask 195584  }
  0x16   :  { %2084 = vst [vmem:[#allocation8_spill] sm:$0xff] %v1293_v4  ;;  %51 = vperm.xlu0 %1167, %v46_v6   ;;  %1133 = vmatprep.subr.msk.mxu0 %vm78_vm0, %v1293_v4  ;;  %v44_v10 = vld [vmem:[%s2063_s1 + $0x8] sm:$0xff]  ;;  %v895_v12 = vld [vmem:[%s2066_s4] sm:$0xff]  ;;  %v897_v14 = vld [vmem:[%s2066_s4 + $0x10] sm:$0xff]  ;;  %s1226_s1 = smov 17   ;;  %s1232_s16 = smov 112  }
  0x17   :  { %2085 = vst [vmem:[#allocation9_spill] sm:$0xff] %v1295_v5  ;;  %1138 = vmatprep.subr.msk.mxu1 %vm78_vm0, %v1295_v5  ;;  %1134 = vmatpush1.msk.msra.mxu0 %vm78_vm0, %v41_v2  ;;  %v896_v11 = vld [vmem:[%s2066_s4 + $0x8] sm:$0xff]  ;;  %s1227_s4 = smov 16   ;;  %s1233_s17 = smov 111   ;;  %v418_v4 = vld [vmem:[#allocation2 + $0x78] sm:$0xff] }
  0x18   :  { %1139 = vmatpush1.msk.msra.mxu1 %vm78_vm0, %v42_v3  ;;  %1135 = vmatmul.mubr.msk.f32.vlgmr.msra.gmra.mrb[0].mxu0 %vm68_vm1, %v43_v7  ;;  %s1234_s23 = smov [#allocation5]  }
  0x19   :  { %1140 = vmatmul.mubr.msk.f32.vlgmr.msra.gmra.mrb[0].mxu1 %vm68_vm1, %v43_v7  ;;  %157 = vmatprep.mubr.f32.mxu0 %v1224_v0  ;;  %s1124_s24 = sshll.u32 %s1234_s23, 4  ;;  %s1125_s24 = int_to_ptr.vmem [resolvable:$true] %s1124_s24 }
  0x1a   :  { %240 = vmatprep.mubr.f32.mxu1 %v1224_v0  ;;  %56 = vperm.xlu0 %1167, %v47_v8   ;;  %s1195_s25 = scalar_lea.vmem %s1125_s24, 256  ;;  %p1200_p9 = scmp.lt.s32.totalorder %s1125_s24, %s1125_s24 }
  0x1b   :  { %61 = vperm.xlu1 %1168, %v48_v9   ;;  %p1196_p8 = scmp.ne.s32.totalorder %s1125_s24, %s1195_s25  ;;  %p1201_p10 = scmp.lt.s32.totalorder %s1195_s25, %s1195_s25 }
  0x1c   :  { %1136 = vmatmul.mubr.msk.f32.gmra.mrb[2].mxu0 %vm68_vm1, %v44_v10 }
  0x1d   :  { %1141 = vmatmul.mubr.msk.f32.gmra.mrb[2].mxu1 %vm68_vm1, %v44_v10  ;;  %163 = vmatprep.mubr.f32.mxu0 %v1224_v0  ;;  %p1202_p11 = por %p1201_p10, %p1200_p9 }
  0x1e   :  { %246 = vmatprep.mubr.f32.mxu1 %v1224_v0  ;;  %905 = vperm.xlu0 %1167, %v896_v11  }
  0x1f   :  { %900 = vperm.xlu1 %1168, %v895_v12   ;;  %p1203_p12 = pnand %p1202_p11, %p1196_p8 }
  0x20   :  { %1137 = vmatmul.mubr.msk.f32.gmra.mrb[4].mxu0 %vm68_vm1, %v45_v13 }
  0x21   :  { %1142 = vmatmul.mubr.msk.f32.gmra.mrb[4].mxu1 %vm68_vm1, %v45_v13  ;;  %1024 = vmatprep.mubr.f32.mxu0 %v1224_v0 }
  0x22   :  { %1095 = vmatprep.mubr.f32.mxu1 %v1224_v0 }
  0x23   :  { %910 = vperm.xlu1 %1168, %v897_v14  }
  0x95   :  { %v1332_v15 = vpop.permute.xlu0 %51 }
  0x99   :  { %v1336_v22 = vpop.permute.xlu0 %56 }
  0x9a   :  { %v62_v53 = vpop.permute.xlu1 %61 }
  0x9d   :  { %v1486_v56 = vpop.permute.xlu0 %905 }
  0x9e   :  { %v1470_v54 = vpop.permute.xlu1 %900  ;;  %2088 = vst [vmem:[#allocation12_spill] sm:$0xff] %v1486_v56 }
  0x9f   :  { %2086 = vst [vmem:[#allocation10_spill] sm:$0xff] %v1470_v54 }
  0xa2   :  { %v1480_v55 = vpop.permute.xlu1 %910 }
  0xa3   :  { %2087 = vst [vmem:[#allocation11_spill] sm:$0xff] %v1480_v55 }
  0xeb   :  { %v153_v16 = vpop.f32.mrb[0].mxu0 }
  0xec   :  { %v236_v17 = vpop.f32.mrb[0].mxu1  ;;  %v154_v18 = vadd.f32 %v153_v16, %v1332_v15  ;;  %v155_v20 = vpop.f32.mrb[1].mxu0 }
  0xed   :  { %v237_v19 = vadd.f32 %v236_v17, %v1332_v15  ;;  %v238_v21 = vpop.f32.mrb[1].mxu1  ;;  %v156_v41 = vadd.f32 %v155_v20, %v1332_v15 }
  0xee   :  { %v253_v23 = vmax.f32 %v154_v18, 0.0  ;;  %v239_v43 = vadd.f32 %v238_v21, %v1332_v15 }
  0xef   :  { %v159_v24 = vpop.f32.mrb[2].mxu0  ;;  %v255_v27 = vmax.f32 %v237_v19, 0.0  ;;  %v254_v42 = vmax.f32 %v156_v41, 0.0 }
  0xf0   :  { %v242_v25 = vpop.f32.mrb[2].mxu1  ;;  %v1338_v26 = vmin.f32 %v253_v23, 6.0  ;;  %v160_v28 = vadd.f32 %v159_v24, %v1336_v22  ;;  %v161_v30 = vpop.f32.mrb[3].mxu0  ;;  %v256_v46 = vmax.f32 %v239_v43, 0.0 }
  0xf1   :  { %v243_v29 = vadd.f32 %v242_v25, %v1336_v22  ;;  %v244_v31 = vpop.f32.mrb[3].mxu1  ;;  %v1348_v35 = vmin.f32 %v255_v27, 6.0  ;;  %v162_v44 = vadd.f32 %v161_v30, %v1336_v22  ;;  %v1421_v45 = vmin.f32 %v254_v42, 6.0 }
  0xf2   :  { %v257_v32 = vmax.f32 %v160_v28, 0.0  ;;  %302 = vrot.lane.b32.xlu1 %v1338_v26, %s1226_s1  ;;  %v245_v48 = vadd.f32 %v244_v31, %v1336_v22  ;;  %v1428_v49 = vmin.f32 %v256_v46, 6.0  ;;  %v343_v46 = vld [vmem:[#allocation2 + $0x10] sm:$0xff] }
  0xf3   :  { %v1344_v33 = vpop.f32.mrb[4].mxu0  ;;  %v259_v37 = vmax.f32 %v243_v29, 0.0  ;;  %v258_v47 = vmax.f32 %v162_v44, 0.0  ;;  %v280_v44 = vld [vmem:[#allocation2 + $0x190] sm:$0xff] }
  0xf4   :  { %v1346_v34 = vpop.f32.mrb[4].mxu1  ;;  %v1350_v36 = vmin.f32 %v257_v32, 6.0  ;;  %v1352_v38 = vpop.f32.mrb[5].mxu0  ;;  %v260_v51 = vmax.f32 %v245_v48, 0.0  ;;  %v166_v58 = vadd.f32 %v1344_v33, %v62_v53 }
  0xf5   :  { %v1354_v39 = vpop.f32.mrb[5].mxu1  ;;  %v1360_v40 = vmin.f32 %v259_v37, 6.0  ;;  %v1430_v50 = vmin.f32 %v258_v47, 6.0  ;;  %v249_v62 = vadd.f32 %v1346_v34, %v62_v53  ;;  %v168_v3 = vadd.f32 %v1352_v38, %v62_v53 }
  0xf6   :  { %304 = vrot.lane.b32.xlu0 %v1350_v36, %s1226_s1  ;;  %314 = vrot.lane.b32.xlu1 %v1348_v35, %s1226_s1  ;;  %v1436_v52 = vmin.f32 %v260_v51, 6.0  ;;  %v261_v61 = vmax.f32 %v166_v58, 0.0  ;;  %v251_v10 = vadd.f32 %v1354_v39, %v62_v53  ;;  %v326_v37 = vlaneseq }
  0xf7   :  { %v263_v2 = vmax.f32 %v249_v62, 0.0  ;;  %v262_v9 = vmax.f32 %v168_v3, 0.0  ;;  %v292_v53 = vmul.f32 %v280_v44, %v1348_v35  ;;  %v347_v62 = vld [vmem:[#allocation2 + $0x30] sm:$0xff] }
  0xf8   :  { %v1512_v1 = vmin.f32 %v261_v61, 6.0  ;;  %v264_v14 = vmax.f32 %v251_v10, 0.0  ;;  %v1618_v41 = vand.u32 127, %v326_v37  ;;  %v284_v61 = vld [vmem:[#allocation2 + $0x1b0] sm:$0xff]  ;;  %v344_v37 = vld [vmem:[#allocation2 + $0x18] sm:$0xff] }
  0xf9   :  { %v1523_v8 = vmin.f32 %v263_v2, 6.0  ;;  %v1534_v13 = vmin.f32 %v262_v9, 6.0 }
  0xfa   :  { %316 = vrot.lane.b32.xlu0 %v1360_v40, %s1226_s1  ;;  %377 = vrot.lane.b32.xlu1 %v1338_v26, %s1227_s4  ;;  %2089 = vst [vmem:[#allocation13_spill] sm:$0xff] %v1512_v1  ;;  %v1544_v17 = vmin.f32 %v264_v14, 6.0  ;;  %vm328_vm2 = vcmp.lt.s32.totalorder %v1618_v41, 17  ;;  %vm401_vm3 = vcmp.lt.s32.totalorder %v1618_v41, 16  ;;  %vm475_vm4 = vcmp.lt.s32.totalorder %v1618_v41, 15 }
  0xfb   :  { %2090 = vst [vmem:[#allocation14_spill] sm:$0xff] %v1523_v8  ;;  %2091 = vst [vmem:[#allocation15_spill] sm:$0xff] %v1534_v13  ;;  %vm549_vm5 = vcmp.lt.s32.totalorder %v1618_v41, 1  ;;  %vm623_vm6 = vcmp.lt.s32.totalorder %v1618_v41, 127  ;;  %vm697_vm7 = vcmp.lt.s32.totalorder %v1618_v41, 113  ;;  %vm771_vm8 = vcmp.lt.s32.totalorder %v1618_v41, 112 }
  0xfc   :  { %2092 = vst [vmem:[#allocation16_spill] sm:$0xff] %v1544_v17  ;;  %vm845_vm9 = vcmp.lt.s32.totalorder %v1618_v41, 111 }
  0xfe   :  { %379 = vrot.lane.b32.xlu0 %v1350_v36, %s1227_s4  ;;  %389 = vrot.lane.b32.xlu1 %v1348_v35, %s1227_s4 }
 0x102   :  { %391 = vrot.lane.b32.xlu0 %v1360_v40, %s1227_s4  ;;  %451 = vrot.lane.b32.xlu1 %v1338_v26, %s1228_s12 }
 0x106   :  { %453 = vrot.lane.b32.xlu0 %v1350_v36, %s1228_s12  ;;  %463 = vrot.lane.b32.xlu1 %v1348_v35, %s1228_s12 }
 0x10a   :  { %465 = vrot.lane.b32.xlu0 %v1360_v40, %s1228_s12  ;;  %525 = vrot.lane.b32.xlu1 %v1338_v26, %s1229_s13 }
 0x10e   :  { %527 = vrot.lane.b32.xlu0 %v1350_v36, %s1229_s13  ;;  %537 = vrot.lane.b32.xlu1 %v1348_v35, %s1229_s13 }
 0x112   :  { %539 = vrot.lane.b32.xlu0 %v1360_v40, %s1229_s13  ;;  %599 = vrot.lane.b32.xlu1 %v1338_v26, %s1230_s14 }
 0x116   :  { %601 = vrot.lane.b32.xlu0 %v1350_v36, %s1230_s14  ;;  %611 = vrot.lane.b32.xlu1 %v1348_v35, %s1230_s14 }
 0x11a   :  { %613 = vrot.lane.b32.xlu0 %v1360_v40, %s1230_s14  ;;  %673 = vrot.lane.b32.xlu1 %v1338_v26, %s1231_s15 }
 0x11e   :  { %675 = vrot.lane.b32.xlu0 %v1350_v36, %s1231_s15  ;;  %685 = vrot.lane.b32.xlu1 %v1348_v35, %s1231_s15 }
 0x122   :  { %687 = vrot.lane.b32.xlu0 %v1360_v40, %s1231_s15  ;;  %747 = vrot.lane.b32.xlu1 %v1338_v26, %s1232_s16 }
 0x126   :  { %749 = vrot.lane.b32.xlu0 %v1350_v36, %s1232_s16  ;;  %759 = vrot.lane.b32.xlu1 %v1348_v35, %s1232_s16 }
 0x12a   :  { %761 = vrot.lane.b32.xlu0 %v1360_v40, %s1232_s16  ;;  %821 = vrot.lane.b32.xlu1 %v1338_v26, %s1233_s17 }
 0x12e   :  { %823 = vrot.lane.b32.xlu0 %v1350_v36, %s1233_s17  ;;  %833 = vrot.lane.b32.xlu1 %v1348_v35, %s1233_s17  ;;  %v296_v35 = vmul.f32 %v284_v61, %v1360_v40 }
 0x132   :  { %835 = vrot.lane.b32.xlu0 %v1360_v40, %s1233_s17  ;;  %308 = vrot.lane.b32.xlu1 %v1421_v45, %s1226_s1 }
 0x136   :  { %310 = vrot.lane.b32.xlu0 %v1430_v50, %s1226_s1  ;;  %320 = vrot.lane.b32.xlu1 %v1428_v49, %s1226_s1 }
 0x13a   :  { %322 = vrot.lane.b32.xlu0 %v1436_v52, %s1226_s1  ;;  %383 = vrot.lane.b32.xlu1 %v1421_v45, %s1227_s4 }
 0x13e   :  { %385 = vrot.lane.b32.xlu0 %v1430_v50, %s1227_s4  ;;  %395 = vrot.lane.b32.xlu1 %v1428_v49, %s1227_s4 }
 0x142   :  { %397 = vrot.lane.b32.xlu0 %v1436_v52, %s1227_s4  ;;  %457 = vrot.lane.b32.xlu1 %v1421_v45, %s1228_s12 }
 0x146   :  { %459 = vrot.lane.b32.xlu0 %v1430_v50, %s1228_s12  ;;  %469 = vrot.lane.b32.xlu1 %v1428_v49, %s1228_s12 }
 0x14a   :  { %471 = vrot.lane.b32.xlu0 %v1436_v52, %s1228_s12  ;;  %531 = vrot.lane.b32.xlu1 %v1421_v45, %s1229_s13 }
 0x14e   :  { %533 = vrot.lane.b32.xlu0 %v1430_v50, %s1229_s13  ;;  %543 = vrot.lane.b32.xlu1 %v1428_v49, %s1229_s13 }
 0x152   :  { %545 = vrot.lane.b32.xlu0 %v1436_v52, %s1229_s13  ;;  %605 = vrot.lane.b32.xlu1 %v1421_v45, %s1230_s14 }
 0x156   :  { %607 = vrot.lane.b32.xlu0 %v1430_v50, %s1230_s14  ;;  %617 = vrot.lane.b32.xlu1 %v1428_v49, %s1230_s14 }
 0x15a   :  { %619 = vrot.lane.b32.xlu0 %v1436_v52, %s1230_s14  ;;  %679 = vrot.lane.b32.xlu1 %v1421_v45, %s1231_s15 }
 0x15e   :  { %681 = vrot.lane.b32.xlu0 %v1430_v50, %s1231_s15  ;;  %691 = vrot.lane.b32.xlu1 %v1428_v49, %s1231_s15 }
 0x162   :  { %693 = vrot.lane.b32.xlu0 %v1436_v52, %s1231_s15  ;;  %753 = vrot.lane.b32.xlu1 %v1421_v45, %s1232_s16 }
 0x164   :  { %v1488_v57 = vpop.permute.xlu1 %302 }
 0x166   :  { %755 = vrot.lane.b32.xlu0 %v1430_v50, %s1232_s16  ;;  %765 = vrot.lane.b32.xlu1 %v1428_v49, %s1232_s16 }
 0x168   :  { %v1495_v59 = vpop.permute.xlu0 %304  ;;  %v1497_v60 = vpop.permute.xlu1 %314 }
 0x16a   :  { %767 = vrot.lane.b32.xlu0 %v1436_v52, %s1232_s16  ;;  %827 = vrot.lane.b32.xlu1 %v1421_v45, %s1233_s17 }
 0x16c   :  { %v1504_v63 = vpop.permute.xlu0 %316  ;;  %v1506_v0 = vpop.permute.xlu1 %377 }
 0x16e   :  { %829 = vrot.lane.b32.xlu0 %v1430_v50, %s1233_s17  ;;  %839 = vrot.lane.b32.xlu1 %v1428_v49, %s1233_s17 }
 0x170   :  { %v1515_v6 = vpop.permute.xlu0 %379  ;;  %v1517_v7 = vpop.permute.xlu1 %389 }
 0x172   :  { %841 = vrot.lane.b32.xlu0 %v1436_v52, %s1233_s17  ;;  %306 = vrot.lane.b32.xlu1 %v1512_v1, %s1226_s1 }
 0x174   :  { %v1526_v11 = vpop.permute.xlu0 %391  ;;  %v1528_v12 = vpop.permute.xlu1 %451 }
 0x176   :  { %825 = vrot.lane.b32.xlu0 %v1512_v1, %s1233_s17  ;;  %318 = vrot.lane.b32.xlu1 %v1523_v8, %s1226_s1 }
 0x178   :  { %v1536_v15 = vpop.permute.xlu0 %453  ;;  %v1538_v16 = vpop.permute.xlu1 %463 }
 0x17a   :  { %312 = vrot.lane.b32.xlu0 %v1534_v13, %s1226_s1  ;;  %381 = vrot.lane.b32.xlu1 %v1512_v1, %s1227_s4 }
 0x17c   :  { %v1546_v18 = vpop.permute.xlu0 %465  ;;  %v1548_v19 = vpop.permute.xlu1 %525 }
 0x17e   :  { %324 = vrot.lane.b32.xlu0 %v1544_v17, %s1226_s1  ;;  %393 = vrot.lane.b32.xlu1 %v1523_v8, %s1227_s4 }
 0x180   :  { %v1554_v20 = vpop.permute.xlu0 %527  ;;  %v1556_v21 = vpop.permute.xlu1 %537 }
 0x182   :  { %387 = vrot.lane.b32.xlu0 %v1534_v13, %s1227_s4  ;;  %455 = vrot.lane.b32.xlu1 %v1512_v1, %s1228_s12 }
 0x184   :  { %v1562_v22 = vpop.permute.xlu0 %539  ;;  %v1564_v23 = vpop.permute.xlu1 %599 }
 0x186   :  { %399 = vrot.lane.b32.xlu0 %v1544_v17, %s1227_s4  ;;  %467 = vrot.lane.b32.xlu1 %v1523_v8, %s1228_s12 }
 0x188   :  { %v1570_v24 = vpop.permute.xlu0 %601  ;;  %v1572_v25 = vpop.permute.xlu1 %611 }
 0x18a   :  { %461 = vrot.lane.b32.xlu0 %v1534_v13, %s1228_s12  ;;  %529 = vrot.lane.b32.xlu1 %v1512_v1, %s1229_s13 }
 0x18c   :  { %v1578_v27 = vpop.permute.xlu0 %613  ;;  %v1580_v28 = vpop.permute.xlu1 %673 }
 0x18e   :  { %473 = vrot.lane.b32.xlu0 %v1544_v17, %s1228_s12  ;;  %541 = vrot.lane.b32.xlu1 %v1523_v8, %s1229_s13 }
 0x190   :  { %v1586_v29 = vpop.permute.xlu0 %675  ;;  %v1588_v30 = vpop.permute.xlu1 %685 }
 0x192   :  { %535 = vrot.lane.b32.xlu0 %v1534_v13, %s1229_s13  ;;  %603 = vrot.lane.b32.xlu1 %v1512_v1, %s1230_s14 }
 0x194   :  { %v1594_v31 = vpop.permute.xlu0 %687  ;;  %v1596_v32 = vpop.permute.xlu1 %747 }
 0x196   :  { %547 = vrot.lane.b32.xlu0 %v1544_v17, %s1229_s13  ;;  %615 = vrot.lane.b32.xlu1 %v1523_v8, %s1230_s14 }
 0x198   :  { %v1602_v33 = vpop.permute.xlu0 %749  ;;  %v1604_v34 = vpop.permute.xlu1 %759 }
 0x199   :  { %2093 = vst [vmem:[#allocation17_spill] sm:$0xff] %v1602_v33  ;;  %v345_v33 = vld [vmem:[#allocation2 + $0x20] sm:$0xff] }
 0x19a   :  { %609 = vrot.lane.b32.xlu0 %v1534_v13, %s1230_s14  ;;  %677 = vrot.lane.b32.xlu1 %v1512_v1, %s1231_s15 }
 0x19c   :  { %v1610_v38 = vpop.permute.xlu0 %761  ;;  %v1612_v39 = vpop.permute.xlu1 %821 }
 0x19d   :  { %2094 = vst [vmem:[#allocation18_spill] sm:$0xff] %v1612_v39  ;;  %v566_v39 = vld [vmem:[#allocation2 + $0x138] sm:$0xff] }
 0x19e   :  { %621 = vrot.lane.b32.xlu0 %v1544_v17, %s1230_s14  ;;  %689 = vrot.lane.b32.xlu1 %v1523_v8, %s1231_s15 }
 0x1a0   :  { %v1620_v42 = vpop.permute.xlu0 %823  ;;  %v1622_v43 = vpop.permute.xlu1 %833 }
 0x1a1   :  { %2095 = vst [vmem:[#allocation19_spill] sm:$0xff] %v1620_v42  ;;  %2096 = vst [vmem:[#allocation20_spill] sm:$0xff] %v1622_v43 }
 0x1a2   :  { %683 = vrot.lane.b32.xlu0 %v1534_v13, %s1231_s15  ;;  %751 = vrot.lane.b32.xlu1 %v1512_v1, %s1232_s16 }
 0x1a4   :  { %v1629_v47 = vpop.permute.xlu0 %835  ;;  %v1631_v48 = vpop.permute.xlu1 %308 }
 0x1a5   :  { %2097 = vst [vmem:[#allocation21_spill] sm:$0xff] %v1629_v47  ;;  %v332_v51 = vsel %vm328_vm2, %v1631_v48, %v1497_v60 }
 0x1a6   :  { %v355_v58 = vmul.f32 %v343_v46, %v332_v51  ;;  %695 = vrot.lane.b32.xlu0 %v1544_v17, %s1231_s15  ;;  %763 = vrot.lane.b32.xlu1 %v1523_v8, %s1232_s16  ;;  %v417_v46 = vld [vmem:[#allocation2 + $0x70] sm:$0xff] }
 0x1a8   :  { %v367_v2 = vadd.f32 %v355_v58, %v292_v53  ;;  %v1642_v3 = vpop.permute.xlu0 %310  ;;  %v1644_v9 = vpop.permute.xlu1 %320  ;;  %v281_v58 = vld [vmem:[#allocation2 + $0x198] sm:$0xff] }
 0x1a9   :  { %v333_v10 = vsel %vm328_vm2, %v1642_v3, %v1504_v63  ;;  %v329_v44 = vsel %vm328_vm2, %v1497_v60, %v1644_v9  ;;  %v348_v60 = vld [vmem:[#allocation2 + $0x38] sm:$0xff]  ;;  %v293_v5 = vmul.f32 %v281_v58, %v1428_v49 }
 0x1aa   :  { %v359_v14 = vmul.f32 %v347_v62, %v333_v10  ;;  %757 = vrot.lane.b32.xlu0 %v1534_v13, %s1232_s16  ;;  %831 = vrot.lane.b32.xlu1 %v1534_v13, %s1233_s17  ;;  %v356_v62 = vmul.f32 %v344_v37, %v329_v44  ;;  %v285_v44 = vld [vmem:[#allocation2 + $0x1b8] sm:$0xff]  ;;  %v950_v13 = vld [vmem:[%s2068_s6] sm:$0xf] }
 0x1ab   :  { %v297_v56 = vmul.f32 %v285_v44, %v1436_v52  ;;  %v495_v52 = vld [vmem:[#allocation2 + $0xf0] sm:$0xff] }
 0x1ac   :  { %v371_v51 = vadd.f32 %v359_v14, %v296_v35  ;;  %v1660_v53 = vpop.permute.xlu0 %322  ;;  %v1662_v40 = vpop.permute.xlu1 %383  ;;  %v421_v14 = vld [vmem:[#allocation2 + $0x90] sm:$0xff] }
 0x1ad   :  { %v405_v61 = vsel %vm401_vm3, %v1662_v40, %v1517_v7  ;;  %v330_v35 = vsel %vm328_vm2, %v1504_v63, %v1660_v53 }
 0x1ae   :  { %v429_v10 = vmul.f32 %v417_v46, %v405_v61  ;;  %769 = vrot.lane.b32.xlu0 %v1544_v17, %s1232_s16  ;;  %843 = vrot.lane.b32.xlu1 %v1544_v17, %s1233_s17  ;;  %v368_v61 = vadd.f32 %v356_v62, %v293_v5  ;;  %v360_v49 = vmul.f32 %v348_v60, %v330_v35  ;;  %v491_v17 = vld [vmem:[#allocation2 + $0xd0] sm:$0xff] }
 0x1b0   :  { %v441_v55 = vadd.f32 %v429_v10, %v367_v2  ;;  %v1677_v1 = vpop.permute.xlu0 %385  ;;  %v1679_v37 = vpop.permute.xlu1 %395  ;;  %v422_v10 = vld [vmem:[#allocation2 + $0x98] sm:$0xff]  ;;  %v372_v62 = vadd.f32 %v360_v49, %v297_v56  ;;  %v278_v56 = vld [vmem:[#allocation2 + $0x180] sm:$0xff] }
 0x1b1   :  { %v406_v46 = vsel %vm401_vm3, %v1677_v1, %v1526_v11  ;;  %v402_v63 = vsel %vm401_vm3, %v1517_v7, %v1679_v37 }
 0x1b2   :  { %v433_v2 = vmul.f32 %v421_v14, %v406_v46  ;;  %v430_v58 = vmul.f32 %v418_v4, %v402_v63  ;;  %837 = vrot.lane.b32.xlu0 %v1523_v8, %s1233_s17 }
 0x1b4   :  { %v445_v54 = vadd.f32 %v433_v2, %v371_v51  ;;  %v442_v42 = vadd.f32 %v430_v58, %v368_v61  ;;  %v1696_v7 = vpop.permute.xlu0 %397  ;;  %v1698_v47 = vpop.permute.xlu1 %457  ;;  %v492_v51 = vld [vmem:[#allocation2 + $0xd8] sm:$0xff]  ;;  %v342_v58 = vld [vmem:[#allocation2 + $0x8] sm:$0xff] }
 0x1b5   :  { %v403_v4 = vsel %vm401_vm3, %v1526_v11, %v1696_v7  ;;  %v479_v5 = vsel %vm475_vm4, %v1698_v47, %v1538_v16  ;;  %v496_v2 = vld [vmem:[#allocation2 + $0xf8] sm:$0xff] }
 0x1b6   :  { %v434_v60 = vmul.f32 %v422_v10, %v403_v4  ;;  %v503_v35 = vmul.f32 %v491_v17, %v479_v5  ;;  %953 = vperm.xlu0 %1167, %v950_v13   ;;  %v279_v13 = vld [vmem:[#allocation2 + $0x188] sm:$0xff]  ;;  %v335_v10 = vsel %vm328_vm2, %v1488_v57, %v1631_v48  ;;  %v282_v5 = vld [vmem:[#allocation2 + $0x1a0] sm:$0xff] }
 0x1b7   :  { %v283_v4 = vld [vmem:[#allocation2 + $0x1a8] sm:$0xff]  ;;  %v294_v8 = vmul.f32 %v282_v5, %v1350_v36  ;;  %v408_v36 = vsel %vm401_vm3, %v1506_v0, %v1662_v40  ;;  %v411_v40 = vsel %vm401_vm3, %v1679_v37, %v1506_v0 }
 0x1b8   :  { %v446_v14 = vadd.f32 %v434_v60, %v372_v62  ;;  %v515_v44 = vadd.f32 %v503_v35, %v441_v55  ;;  %v460_v46 = vpop.permute.xlu0 %459  ;;  %v1708_v63 = vpop.permute.xlu1 %469  ;;  %v565_v55 = vld [vmem:[#allocation2 + $0x130] sm:$0xff] }
 0x1b9   :  { %v480_v11 = vsel %vm475_vm4, %v460_v46, %v1546_v18  ;;  %v476_v61 = vsel %vm475_vm4, %v1538_v16, %v1708_v63 }
 0x1ba   :  { %v507_v49 = vmul.f32 %v495_v52, %v480_v11  ;;  %v504_v17 = vmul.f32 %v492_v51, %v476_v61  ;;  %v346_v52 = vld [vmem:[#allocation2 + $0x28] sm:$0xff]  ;;  %v336_v51 = vsel %vm328_vm2, %v1495_v59, %v1642_v3  ;;  %v290_v11 = vmul.f32 %v278_v56, %v1338_v26  ;;  %v341_v61 = vld [vmem:[#allocation2] sm:$0xff] }
 0x1bb   :  { %v354_v26 = vmul.f32 %v342_v58, %v335_v10  ;;  %v295_v56 = vmul.f32 %v283_v4, %v1430_v50  ;;  %v358_v43 = vmul.f32 %v346_v52, %v336_v51  ;;  %v490_v51 = vld [vmem:[#allocation2 + $0xc8] sm:$0xff] }
 0x1bc   :  { %v519_v62 = vadd.f32 %v507_v49, %v445_v54  ;;  %v516_v60 = vadd.f32 %v504_v17, %v442_v42  ;;  %v1722_v35 = vpop.permute.xlu0 %471  ;;  %v532_v16 = vpop.permute.xlu1 %531  ;;  %v291_v42 = vmul.f32 %v279_v13, %v1421_v45  ;;  %v338_v49 = vsel %vm328_vm2, %v1644_v9, %v1488_v57 }
 0x1bd   :  { %v477_v48 = vsel %vm475_vm4, %v1546_v18, %v1722_v35  ;;  %v553_v54 = vsel %vm549_vm5, %v532_v16, %v1556_v21  ;;  %v569_v18 = vld [vmem:[#allocation2 + $0x150] sm:$0xff]  ;;  %v339_v45 = vsel %vm328_vm2, %v1660_v53, %v1495_v59  ;;  %v353_v50 = vmul.f32 %v341_v61, %v338_v49  ;;  %v420_v53 = vld [vmem:[#allocation2 + $0x88] sm:$0xff] }
 0x1be   :  { %v508_v3 = vmul.f32 %v496_v2, %v477_v48  ;;  %v577_v17 = vmul.f32 %v565_v55, %v553_v54  ;;  %v416_v55 = vld [vmem:[#allocation2 + $0x68] sm:$0xff]  ;;  %v366_v5 = vadd.f32 %v354_v26, %v291_v42  ;;  %v357_v52 = vmul.f32 %v345_v33, %v339_v45  ;;  %v570_v48 = vld [vmem:[#allocation2 + $0x158] sm:$0xff] }
 0x1bf   :  { %v494_v54 = vld [vmem:[#allocation2 + $0xe8] sm:$0xff]  ;;  %v483_v61 = vsel %vm475_vm4, %v1536_v15, %v460_v46  ;;  %v370_v26 = vadd.f32 %v358_v43, %v295_v56 }
 0x1c0   :  { %v520_v13 = vadd.f32 %v508_v3, %v446_v14  ;;  %v1748_v57 = vadd.f32 %v577_v17, %v515_v44  ;;  %v534_v9 = vpop.permute.xlu0 %533  ;;  %v1750_v2 = vpop.permute.xlu1 %543  ;;  %v409_v14 = vsel %vm401_vm3, %v1515_v6, %v1677_v1  ;;  %v415_v44 = vld [vmem:[#allocation2 + $0x60] sm:$0xff]  ;;  %v428_v1 = vmul.f32 %v416_v55, %v408_v36  ;;  %v564_v3 = vld [vmem:[#allocation2 + $0x128] sm:$0xff] }
 0x1c1   :  { %v554_v58 = vsel %vm549_vm5, %v534_v9, %v1562_v22  ;;  %v550_v59 = vsel %vm549_vm5, %v1556_v21, %v1750_v2  ;;  %v482_v21 = vsel %vm475_vm4, %v1528_v12, %v1698_v47  ;;  %v432_v42 = vmul.f32 %v420_v53, %v409_v14  ;;  %v568_v14 = vld [vmem:[#allocation2 + $0x148] sm:$0xff] }
 0x1c2   :  { %v581_v10 = vmul.f32 %v569_v18, %v554_v58  ;;  %v578_v4 = vmul.f32 %v566_v39, %v550_v59  ;;  %v427_v49 = vmul.f32 %v415_v44, %v411_v40  ;;  %v556_v47 = vsel %vm549_vm5, %v1548_v19, %v532_v16  ;;  %v638_v58 = vld [vmem:[#allocation2 + $0x1e8] sm:$0xff]  ;;  %v639_v59 = vld [vmem:[#allocation2 + $0x1f0] sm:$0xff] }
 0x1c3   :  { %v365_v18 = vadd.f32 %v353_v50, %v290_v11  ;;  %v502_v46 = vmul.f32 %v490_v51, %v482_v21  ;;  %v369_v45 = vadd.f32 %v357_v52, %v294_v8  ;;  %v412_v55 = vsel %vm401_vm3, %v1696_v7, %v1515_v6  ;;  %v642_v51 = vld [vmem:[#allocation2 + $0x208] sm:$0xff]  ;;  %v643_v21 = vld [vmem:[#allocation2 + $0x210] sm:$0xff] }
 0x1c4   :  { %v1779_v0 = vadd.f32 %v581_v10, %v519_v62  ;;  %v1781_v39 = vadd.f32 %v578_v4, %v516_v60  ;;  %v546_v33 = vpop.permute.xlu0 %545  ;;  %v606_v37 = vpop.permute.xlu1 %605  ;;  %v419_v60 = vld [vmem:[#allocation2 + $0x80] sm:$0xff]  ;;  %v506_v36 = vmul.f32 %v494_v54, %v483_v61  ;;  %v440_v53 = vadd.f32 %v428_v1, %v366_v5 }
 0x1c5   :  { %v551_v17 = vsel %vm549_vm5, %v1562_v22, %v546_v33  ;;  %v627_v16 = vsel %vm623_vm6, %v606_v37, %v1572_v25  ;;  %v489_v22 = vld [vmem:[#allocation2 + $0xc0] sm:$0xff]  ;;  %v485_v8 = vsel %vm475_vm4, %v1708_v63, %v1528_v12  ;;  %v576_v43 = vmul.f32 %v564_v3, %v556_v47 }
 0x1c6   :  { %v582_v62 = vmul.f32 %v570_v48, %v551_v17  ;;  %v444_v6 = vadd.f32 %v432_v42, %v370_v26  ;;  %v439_v7 = vadd.f32 %v427_v49, %v365_v18  ;;  %v557_v44 = vsel %vm549_vm5, %v1554_v20, %v534_v9  ;;  %v493_v48 = vld [vmem:[#allocation2 + $0xe0] sm:$0xff] }
 0x1c7   :  { %v431_v10 = vmul.f32 %v419_v60, %v412_v55  ;;  %v514_v4 = vadd.f32 %v502_v46, %v440_v53  ;;  %v650_v5 = vmul.f32 %v638_v58, %v627_v16  ;;  %v486_v52 = vsel %vm475_vm4, %v1722_v35, %v1536_v15  ;;  %v563_v61 = vld [vmem:[#allocation2 + $0x120] sm:$0xff] }
 0x1c8   :  { %v1800_v11 = vadd.f32 %v582_v62, %v520_v13  ;;  %v608_v56 = vpop.permute.xlu0 %607  ;;  %v618_v50 = vpop.permute.xlu1 %617  ;;  %v518_v63 = vadd.f32 %v506_v36, %v444_v6  ;;  %v501_v13 = vmul.f32 %v489_v22, %v485_v8  ;;  %v580_v54 = vmul.f32 %v568_v14, %v557_v44  ;;  %v716_v36 = vld [vmem:[#allocation2 + $0x268] sm:$0xff]  ;;  %v641_v16 = vld [vmem:[#allocation2 + $0x200] sm:$0xff] }
 0x1c9   :  { %v624_v40 = vsel %vm623_vm6, %v1572_v25, %v618_v50  ;;  %v628_v9 = vsel %vm623_vm6, %v608_v56, %v1578_v27  ;;  %v712_v25 = vld [vmem:[#allocation2 + $0x248] sm:$0xff]  ;;  %v588_v1 = vadd.f32 %v576_v43, %v514_v4  ;;  %v559_v42 = vsel %vm549_vm5, %v1750_v2, %v1548_v19  ;;  %v567_v2 = vld [vmem:[#allocation2 + $0x140] sm:$0xff]  ;;  %v640_v4 = vld [vmem:[#allocation2 + $0x1f8] sm:$0xff] }
 0x1ca   :  { %v651_v12 = vmul.f32 %v639_v59, %v624_v40  ;;  %v560_v35 = vsel %vm549_vm5, %v546_v33, %v1554_v20  ;;  %v630_v47 = vsel %vm623_vm6, %v1564_v23, %v606_v37  ;;  %v654_v18 = vmul.f32 %v642_v51, %v628_v9  ;;  %v713_v37 = vld [vmem:[#allocation2 + $0x250] sm:$0xff] }
 0x1cb   :  { %v662_v26 = vadd.f32 %v650_v5, %v588_v1  ;;  %v443_v60 = vadd.f32 %v431_v10, %v369_v45  ;;  %v513_v20 = vadd.f32 %v501_v13, %v439_v7  ;;  %v505_v33 = vmul.f32 %v493_v48, %v486_v52  ;;  %v644_v13 = vld [vmem:[#allocation2 + $0x218] sm:$0xff]  ;;  %v711_v52 = vld [vmem:[#allocation2 + $0x240] sm:$0xff] }
 0x1cc   :  { %v663_v49 = vadd.f32 %v651_v12, %v1748_v57  ;;  %v620_v3 = vpop.permute.xlu0 %619  ;;  %v680_v15 = vpop.permute.xlu1 %679  ;;  %v637_v57 = vld [vmem:[#allocation2 + $0x1e0] sm:$0xff]  ;;  %v575_v55 = vmul.f32 %v563_v61, %v559_v42  ;;  %v592_v58 = vadd.f32 %v580_v54, %v518_v63  ;;  %v579_v43 = vmul.f32 %v567_v2, %v560_v35  ;;  %v717_v12 = vld [vmem:[#allocation2 + $0x270] sm:$0xff]  ;;  %v786_v63 = vld [vmem:[#allocation2 + $0x2a8] sm:$0xff] }
 0x1cd   :  { %v625_v17 = vsel %vm623_vm6, %v1578_v27, %v620_v3  ;;  %v701_v19 = vsel %vm697_vm7, %v680_v15, %v1588_v30  ;;  %v631_v27 = vsel %vm623_vm6, %v1570_v24, %v608_v56  ;;  %v649_v6 = vmul.f32 %v637_v57, %v630_v47  ;;  %v715_v61 = vld [vmem:[#allocation2 + $0x260] sm:$0xff]  ;;  %v787_v2 = vld [vmem:[#allocation2 + $0x2b0] sm:$0xff]  ;;  %v714_v57 = vld [vmem:[#allocation2 + $0x258] sm:$0xff] }
 0x1ce   :  { %v655_v46 = vmul.f32 %v643_v21, %v625_v17  ;;  %v724_v62 = vmul.f32 %v712_v25, %v701_v19  ;;  %v666_v14 = vadd.f32 %v654_v18, %v592_v58  ;;  %v517_v56 = vadd.f32 %v505_v33, %v443_v60  ;;  %v785_v17 = vld [vmem:[#allocation2 + $0x2a0] sm:$0xff]  ;;  %v790_v19 = vld [vmem:[#allocation2 + $0x2c8] sm:$0xff]  ;;  %v718_v18 = vld [vmem:[#allocation2 + $0x278] sm:$0xff] }
 0x1cf   :  { %v653_v10 = vmul.f32 %v641_v16, %v631_v27  ;;  %v633_v5 = vsel %vm623_vm6, %v618_v50, %v1564_v23  ;;  %v704_v51 = vsel %vm697_vm7, %v1580_v28, %v680_v15  ;;  %v2098_v58 = vld [vmem:[#allocation17_spill] sm:$0xff] }
 0x1d0   :  { %v667_v59 = vadd.f32 %v655_v46, %v1779_v0  ;;  %v736_v53 = vadd.f32 %v724_v62, %v662_v26  ;;  %v682_v22 = vpop.permute.xlu0 %681  ;;  %v692_v8 = vpop.permute.xlu1 %691  ;;  %v587_v0 = vadd.f32 %v575_v55, %v513_v20  ;;  %v591_v1 = vadd.f32 %v579_v43, %v517_v56  ;;  %v789_v20 = vld [vmem:[#allocation2 + $0x2c0] sm:$0xff]  ;;  %v788_v56 = vld [vmem:[#allocation2 + $0x2b8] sm:$0xff] }
 0x1d1   :  { %v702_v45 = vsel %vm697_vm7, %v682_v22, %v1594_v31  ;;  %v698_v7 = vsel %vm697_vm7, %v1588_v30, %v692_v8  ;;  %v634_v30 = vsel %vm623_vm6, %v620_v3, %v1570_v24  ;;  %v652_v24 = vmul.f32 %v640_v4, %v633_v5  ;;  %v2099_v5 = vld [vmem:[#allocation20_spill] sm:$0xff] }
 0x1d2   :  { %v728_v44 = vmul.f32 %v716_v36, %v702_v45  ;;  %v725_v40 = vmul.f32 %v713_v37, %v698_v7  ;;  %v661_v54 = vadd.f32 %v649_v6, %v587_v0  ;;  %v705_v42 = vsel %vm697_vm7, %v1586_v29, %v682_v22  ;;  %v791_v45 = vld [vmem:[#allocation2 + $0x2d0] sm:$0xff]  ;;  %v859_v7 = vld [vmem:[#allocation2 + $0x300] sm:$0xff] }
 0x1d3   :  { %v665_v15 = vadd.f32 %v653_v10, %v591_v1  ;;  %v656_v35 = vmul.f32 %v644_v13, %v634_v30  ;;  %v723_v47 = vmul.f32 %v711_v52, %v704_v51  ;;  %v707_v26 = vsel %vm697_vm7, %v692_v8, %v1580_v28  ;;  %v863_v1 = vld [vmem:[#allocation2 + $0x320] sm:$0xff] }
 0x1d4   :  { %v740_v9 = vadd.f32 %v728_v44, %v666_v14  ;;  %v737_v21 = vadd.f32 %v725_v40, %v663_v49  ;;  %v694_v25 = vpop.permute.xlu0 %693  ;;  %v754_v48 = vpop.permute.xlu1 %753  ;;  %v727_v36 = vmul.f32 %v715_v61, %v705_v42  ;;  %v726_v8 = vmul.f32 %v714_v57, %v707_v26  ;;  %v860_v14 = vld [vmem:[#allocation2 + $0x308] sm:$0xff]  ;;  %v2103_v57 = vld [vmem:[#allocation10_spill] sm:$0xff] }
 0x1d5   :  { %v699_v23 = vsel %vm697_vm7, %v1594_v31, %v694_v25  ;;  %v775_v50 = vsel %vm771_vm8, %v754_v48, %v1604_v34  ;;  %v778_v31 = vsel %vm771_vm8, %v1596_v32, %v754_v48  ;;  %v708_v46 = vsel %vm697_vm7, %v694_v25, %v1586_v29 }
 0x1d6   :  { %v729_v3 = vmul.f32 %v717_v12, %v699_v23  ;;  %v798_v49 = vmul.f32 %v786_v63, %v775_v50  ;;  %v664_v29 = vadd.f32 %v652_v24, %v1781_v39  ;;  %v797_v27 = vmul.f32 %v785_v17, %v778_v31  ;;  %v2100_v63 = vld [vmem:[#allocation18_spill] sm:$0xff]  ;;  %v792_v23 = vld [vmem:[#allocation2 + $0x2d8] sm:$0xff]  ;;  %v2102_v17 = vld [vmem:[#allocation19_spill] sm:$0xff] }
 0x1d7   :  { %v668_v22 = vadd.f32 %v656_v35, %v1800_v11  ;;  %v730_v43 = vmul.f32 %v718_v18, %v708_v46  ;;  %v735_v44 = vadd.f32 %v723_v47, %v661_v54  ;;  %v739_v4 = vadd.f32 %v727_v36, %v665_v15  ;;  %v864_v54 = vld [vmem:[#allocation2 + $0x328] sm:$0xff]  ;;  %v2101_v35 = vld [vmem:[#allocation21_spill] sm:$0xff]  ;;  %v865_v36 = vld [vmem:[#allocation2 + $0x330] sm:$0xff] }
 0x1d8   :  { %v741_v62 = vadd.f32 %v729_v3, %v667_v59  ;;  %v810_v60 = vadd.f32 %v798_v49, %v736_v53  ;;  %v756_v33 = vpop.permute.xlu0 %755  ;;  %v766_v55 = vpop.permute.xlu1 %765  ;;  %v861_v3 = vld [vmem:[#allocation2 + $0x310] sm:$0xff]  ;;  %v862_v49 = vld [vmem:[#allocation2 + $0x318] sm:$0xff] }
 0x1d9   :  { %v776_v37 = vsel %vm771_vm8, %v756_v33, %v1610_v38  ;;  %v779_v16 = vsel %vm771_vm8, %v2098_v58, %v756_v33  ;;  %v772_v28 = vsel %vm771_vm8, %v1604_v34, %v766_v55  ;;  %v781_v34 = vsel %vm771_vm8, %v766_v55, %v1596_v32 }
 0x1da   :  { %v802_v59 = vmul.f32 %v790_v19, %v776_v37  ;;  %v799_v53 = vmul.f32 %v787_v2, %v772_v28  ;;  %v801_v6 = vmul.f32 %v789_v20, %v779_v16  ;;  %v809_v30 = vadd.f32 %v797_v27, %v735_v44  ;;  %v866_v28 = vld [vmem:[#allocation2 + $0x338] sm:$0xff] }
 0x1db   :  { %v800_v48 = vmul.f32 %v788_v56, %v781_v34 }
 0x1dc   :  { %v814_v40 = vadd.f32 %v802_v59, %v740_v9  ;;  %v811_v0 = vadd.f32 %v799_v53, %v737_v21  ;;  %v768_v39 = vpop.permute.xlu0 %767  ;;  %v828_v10 = vpop.permute.xlu1 %827  ;;  %v738_v9 = vadd.f32 %v726_v8, %v664_v29  ;;  %v742_v21 = vadd.f32 %v730_v43, %v668_v22 }
 0x1dd   :  { %v773_v11 = vsel %vm771_vm8, %v1610_v38, %v768_v39  ;;  %v849_v12 = vsel %vm845_vm9, %v828_v10, %v2099_v5  ;;  %v852_v13 = vsel %vm845_vm9, %v2100_v63, %v828_v10  ;;  %v813_v25 = vadd.f32 %v801_v6, %v739_v4  ;;  %v2104_v6 = vld [vmem:[#allocation12_spill] sm:$0xff] }
 0x1de   :  { %v803_v52 = vmul.f32 %v791_v45, %v773_v11  ;;  %v871_v51 = vmul.f32 %v859_v7, %v852_v13  ;;  %v872_v32 = vmul.f32 %v860_v14, %v849_v12  ;;  %v782_v38 = vsel %vm771_vm8, %v768_v39, %v2098_v58 }
 0x1df   :  { %v804_v20 = vmul.f32 %v792_v23, %v782_v38 }
 0x1e0   :  { %v815_v50 = vadd.f32 %v803_v52, %v741_v62  ;;  %v883_v24 = vadd.f32 %v871_v51, %v809_v30  ;;  %v884_v61 = vadd.f32 %v872_v32, %v810_v60  ;;  %v830_v42 = vpop.permute.xlu0 %829  ;;  %v840_v15 = vpop.permute.xlu1 %839  ;;  %v812_v60 = vadd.f32 %v800_v48, %v738_v9 }
 0x1e1   :  { %v850_v47 = vsel %vm845_vm9, %v830_v42, %v2101_v35  ;;  %v853_v31 = vsel %vm845_vm9, %v2102_v17, %v830_v42  ;;  %v846_v19 = vsel %vm845_vm9, %v2099_v5, %v840_v15  ;;  %v855_v2 = vsel %vm845_vm9, %v840_v15, %v2100_v63 }
 0x1e2   :  { %v913_v26 = vadd.f32 %v2103_v57, %v883_v24  ;;  %v914_v18 = vadd.f32 %v2103_v57, %v884_v61  ;;  %v875_v46 = vmul.f32 %v863_v1, %v853_v31  ;;  %v876_v62 = vmul.f32 %v864_v54, %v850_v47 }
 0x1e3   :  { %v873_v33 = vmul.f32 %v861_v3, %v846_v19  ;;  %v874_v55 = vmul.f32 %v862_v49, %v855_v2  ;;  %v816_v44 = vadd.f32 %v804_v20, %v742_v21  ;;  %v350_v20 = vld [vmem:[#allocation2 + $0x48] sm:$0xff] }
 0x1e4   :  { %v925_v37 = vmax.f32 %v913_v26, 0.0  ;;  %v887_v58 = vadd.f32 %v875_v46, %v813_v25  ;;  %v888_v16 = vadd.f32 %v876_v62, %v814_v40  ;;  %v842_v29 = vpop.permute.xlu0 %841  ;;  %v1911_v27 = vpop.permute.xlu1 %306  ;;  %v926_v59 = vmax.f32 %v914_v18, 0.0 }
 0x1e5   :  { %v885_v53 = vadd.f32 %v873_v33, %v811_v0  ;;  %v886_v22 = vadd.f32 %v874_v55, %v812_v60  ;;  %v847_v8 = vsel %vm845_vm9, %v2101_v35, %v842_v29  ;;  %v856_v43 = vsel %vm845_vm9, %v842_v29, %v2102_v17  ;;  %v351_v33 = vld [vmem:[#allocation2 + $0x50] sm:$0xff]  ;;  %v287_v29 = vld [vmem:[#allocation2 + $0x1c8] sm:$0xff] }
 0x1e6   :  { %v917_v45 = vadd.f32 %v2104_v6, %v887_v58  ;;  %v918_v7 = vadd.f32 %v2104_v6, %v888_v16  ;;  %v877_v14 = vmul.f32 %v865_v36, %v847_v8  ;;  %v878_v34 = vmul.f32 %v866_v28, %v856_v43  ;;  %v352_v58 = vld [vmem:[#allocation2 + $0x58] sm:$0xff] }
 0x1e7   :  { %v915_v40 = vadd.f32 %v2103_v57, %v885_v53  ;;  %v916_v56 = vadd.f32 %v2103_v57, %v886_v22  ;;  %v937_v5 = vmin.f32 %v925_v37, 6.0  ;;  %v938_v63 = vmin.f32 %v926_v59, 6.0  ;;  %v349_v37 = vld [vmem:[#allocation2 + $0x40] sm:$0xff]  ;;  %v288_v59 = vld [vmem:[#allocation2 + $0x1d0] sm:$0xff] }
 0x1e8   :  { %v929_v0 = vmax.f32 %v917_v45, 0.0  ;;  %v889_v39 = vadd.f32 %v877_v14, %v815_v50  ;;  %v1923_v10 = vpop.permute.xlu0 %825  ;;  %v319_v4 = vpop.permute.xlu1 %318  ;;  %v930_v11 = vmax.f32 %v918_v7, 0.0  ;;  %v890_v12 = vadd.f32 %v878_v34, %v816_v44  ;;  %v286_v53 = vld [vmem:[#allocation2 + $0x1c0] sm:$0xff]  ;;  %v289_v45 = vld [vmem:[#allocation2 + $0x1d8] sm:$0xff]  ;;  %v424_v7 = vld [vmem:[#allocation2 + $0xa8] sm:$0xff] }
 0x1e9   :  { %v927_v30 = vmax.f32 %v915_v40, 0.0  ;;  %v928_v9 = vmax.f32 %v916_v56, 0.0  ;;  %v423_v56 = vld [vmem:[#allocation2 + $0xa0] sm:$0xff]  ;;  %v2105_v34 = vld [vmem:[#allocation15_spill] sm:$0xff] }
 0x1ea   :  { %v941_v13 = vmin.f32 %v929_v0, 6.0  ;;  %v919_v52 = vadd.f32 %v2104_v6, %v889_v39  ;;  %v942_v51 = vmin.f32 %v930_v11, 6.0  ;;  %v920_v32 = vadd.f32 %v2104_v6, %v890_v12  ;;  %v2106_v39 = vld [vmem:[#allocation14_spill] sm:$0xff]  ;;  %v2107_v11 = vld [vmem:[#allocation13_spill] sm:$0xff]  ;;  %v425_v12 = vld [vmem:[#allocation2 + $0xb0] sm:$0xff] }
 0x1eb   :  { %v939_v38 = vmin.f32 %v927_v30, 6.0  ;;  %v940_v24 = vmin.f32 %v928_v9, 6.0  ;;  %v299_v0 = vmul.f32 %v287_v29, %v2105_v34  ;;  %v497_v9 = vld [vmem:[#allocation2 + $0x100] sm:$0xff] }
 0x1ec   :  { %v931_v21 = vmax.f32 %v919_v52, 0.0  ;;  %v313_v25 = vpop.permute.xlu0 %312  ;;  %v382_v48 = vpop.permute.xlu1 %381  ;;  %v1145_v1 = vpack.c.bf16 %v942_v51, %v938_v63  ;;  %v1147_v54 = vpack.c.bf16 %v941_v13, %v937_v5  ;;  %v932_v23 = vmax.f32 %v920_v32, 0.0  ;;  %v2108_v13 = vld [vmem:[#allocation16_spill] sm:$0xff]  ;;  %v426_v51 = vld [vmem:[#allocation2 + $0xb8] sm:$0xff] }
 0x1ed   :  { %v334_v55 = vsel %vm328_vm2, %v313_v25, %v319_v4  ;;  %v337_v36 = vsel %vm328_vm2, %v1911_v27, %v313_v25  ;;  %v298_v5 = vmul.f32 %v286_v53, %v2107_v11  ;;  %v301_v30 = vmul.f32 %v289_v45, %v2108_v13  ;;  %v573_v53 = vld [vmem:[#allocation2 + $0x170] sm:$0xff] }
 0x1ee   :  { %v943_v50 = vmin.f32 %v931_v21, 6.0  ;;  %1146 = vmatprep.subr.bf16.mxu0 %v1145_v1  ;;  %v944_v61 = vmin.f32 %v932_v23, 6.0  ;;  %v362_v43 = vmul.f32 %v350_v20, %v337_v36  ;;  %v363_v6 = vmul.f32 %v351_v33, %v334_v55  ;;  %v500_v20 = vld [vmem:[#allocation2 + $0x118] sm:$0xff] }
 0x1ef   :  { %1148 = vmatpush1.bf16.msra.mxu0 %v1147_v54 }
 0x1f0   :  { %v325_v42 = vpop.permute.xlu0 %324  ;;  %v394_v3 = vpop.permute.xlu1 %393  ;;  %v1151_v49 = vpack.c.bf16 %v943_v50, %v939_v38  ;;  %v1149_v15 = vpack.c.bf16 %v944_v61, %v940_v24  ;;  %v374_v1 = vadd.f32 %v362_v43, %v299_v0  ;;  %v498_v38 = vld [vmem:[#allocation2 + $0x108] sm:$0xff] }
 0x1f1   :  { %v331_v16 = vsel %vm328_vm2, %v319_v4, %v325_v42  ;;  %v340_v28 = vsel %vm328_vm2, %v325_v42, %v1911_v27  ;;  %v300_v4 = vmul.f32 %v288_v59, %v2106_v39 }
 0x1f2   :  { %1150 = vmatprep.subr.bf16.mxu1 %v1149_v15  ;;  %v361_v44 = vmul.f32 %v349_v37, %v340_v28  ;;  %v364_v40 = vmul.f32 %v352_v58, %v331_v16  ;;  %v572_v37 = vld [vmem:[#allocation2 + $0x168] sm:$0xff]  ;;  %v645_v16 = vld [vmem:[#allocation2 + $0x220] sm:$0xff] }
 0x1f3   :  { %1152 = vmatpush1.bf16.msra.mxu1 %v1151_v49  ;;  %v375_v54 = vadd.f32 %v363_v6, %v300_v4  ;;  %v571_v49 = vld [vmem:[#allocation2 + $0x160] sm:$0xff]  ;;  %v646_v4 = vld [vmem:[#allocation2 + $0x228] sm:$0xff] }
 0x1f4   :  { %v388_v35 = vpop.permute.xlu0 %387  ;;  %v456_v47 = vpop.permute.xlu1 %455  ;;  %v373_v24 = vadd.f32 %v361_v44, %v298_v5  ;;  %v376_v61 = vadd.f32 %v364_v40, %v301_v30 }
 0x1f5   :  { %v410_v14 = vsel %vm401_vm3, %v382_v48, %v388_v35  ;;  %v407_v63 = vsel %vm401_vm3, %v388_v35, %v394_v3  ;;  %v499_v35 = vld [vmem:[#allocation2 + $0x110] sm:$0xff] }
 0x1f6   :  { %v436_v52 = vmul.f32 %v424_v7, %v410_v14  ;;  %v437_v42 = vmul.f32 %v425_v12, %v407_v63  ;;  %v719_v14 = vld [vmem:[#allocation2 + $0x280] sm:$0xff]  ;;  %v647_v12 = vld [vmem:[#allocation2 + $0x230] sm:$0xff]  ;;  %v648_v63 = vld [vmem:[#allocation2 + $0x238] sm:$0xff] }
 0x1f8   :  { %v400_v17 = vpop.permute.xlu0 %399  ;;  %v468_v31 = vpop.permute.xlu1 %467  ;;  %v448_v36 = vadd.f32 %v436_v52, %v374_v1  ;;  %v449_v6 = vadd.f32 %v437_v42, %v375_v54 }
 0x1f9   :  { %v413_v27 = vsel %vm401_vm3, %v400_v17, %v382_v48  ;;  %v404_v32 = vsel %vm401_vm3, %v394_v3, %v400_v17 }
 0x1fa   :  { %v435_v23 = vmul.f32 %v423_v56, %v413_v27  ;;  %v438_v15 = vmul.f32 %v426_v51, %v404_v32 }
 0x1fc   :  { %v462_v19 = vpop.permute.xlu0 %461  ;;  %v530_v2 = vpop.permute.xlu1 %529  ;;  %v447_v59 = vadd.f32 %v435_v23, %v373_v24  ;;  %v450_v40 = vadd.f32 %v438_v15, %v376_v61  ;;  %v793_v23 = vld [vmem:[#allocation2 + $0x2e0] sm:$0xff] }
 0x1fd   :  { %v484_v50 = vsel %vm475_vm4, %v456_v47, %v462_v19  ;;  %v481_v17 = vsel %vm475_vm4, %v462_v19, %v468_v31 }
 0x1fe   :  { %v511_v45 = vmul.f32 %v499_v35, %v481_v17  ;;  %v794_v17 = vld [vmem:[#allocation2 + $0x2e8] sm:$0xff] }
 0x200   :  { %v474_v57 = vpop.permute.xlu0 %473  ;;  %v1927_v26 = vpop.permute.xlu1 %541  ;;  %v523_v51 = vadd.f32 %v511_v45, %v449_v6  ;;  %v870_v6 = vld [vmem:[#allocation2 + $0x358] sm:$0xff] }
 0x201   :  { %v487_v21 = vsel %vm475_vm4, %v474_v57, %v456_v47  ;;  %v478_v33 = vsel %vm475_vm4, %v468_v31, %v474_v57  ;;  %v510_v47 = vmul.f32 %v498_v38, %v484_v50  ;;  %v574_v57 = vld [vmem:[#allocation2 + $0x178] sm:$0xff] }
 0x202   :  { %v509_v55 = vmul.f32 %v497_v9, %v487_v21  ;;  %v512_v7 = vmul.f32 %v500_v20, %v478_v33 }
 0x204   :  { %v1929_v18 = vpop.permute.xlu0 %535  ;;  %v1931_v46 = vpop.permute.xlu1 %603  ;;  %v521_v56 = vadd.f32 %v509_v55, %v447_v59  ;;  %v524_v32 = vadd.f32 %v512_v7, %v450_v40  ;;  %v867_v55 = vld [vmem:[#allocation2 + $0x340] sm:$0xff] }
 0x205   :  { %v558_v58 = vsel %vm549_vm5, %v530_v2, %v1929_v18  ;;  %v555_v31 = vsel %vm549_vm5, %v1929_v18, %v1927_v26  ;;  %v522_v18 = vadd.f32 %v510_v47, %v448_v36 }
 0x206   :  { %v584_v27 = vmul.f32 %v572_v37, %v558_v58  ;;  %v585_v0 = vmul.f32 %v573_v53, %v555_v31  ;;  %v795_v58 = vld [vmem:[#allocation2 + $0x2f0] sm:$0xff] }
 0x208   :  { %v1933_v62 = vpop.permute.xlu0 %547  ;;  %v1935_v60 = vpop.permute.xlu1 %615  ;;  %v596_v9 = vadd.f32 %v584_v27, %v522_v18  ;;  %v597_v38 = vadd.f32 %v585_v0, %v523_v51  ;;  %v869_v18 = vld [vmem:[#allocation2 + $0x350] sm:$0xff] }
 0x209   :  { %v561_v3 = vsel %vm549_vm5, %v1933_v62, %v530_v2  ;;  %v552_v2 = vsel %vm549_vm5, %v1927_v26, %v1933_v62 }
 0x20a   :  { %v583_v43 = vmul.f32 %v571_v49, %v561_v3  ;;  %v586_v39 = vmul.f32 %v574_v57, %v552_v2  ;;  %v721_v49 = vld [vmem:[#allocation2 + $0x290] sm:$0xff] }
 0x20c   :  { %v1947_v22 = vpop.permute.xlu0 %609  ;;  %v1949_v8 = vpop.permute.xlu1 %677  ;;  %v595_v5 = vadd.f32 %v583_v43, %v521_v56  ;;  %v598_v61 = vadd.f32 %v586_v39, %v524_v32 }
 0x20d   :  { %v632_v28 = vsel %vm623_vm6, %v1931_v46, %v1947_v22  ;;  %v629_v26 = vsel %vm623_vm6, %v1947_v22, %v1935_v60  ;;  %v722_v22 = vld [vmem:[#allocation2 + $0x298] sm:$0xff] }
 0x20e   :  { %v657_v34 = vmul.f32 %v645_v16, %v632_v28  ;;  %v658_v21 = vmul.f32 %v646_v4, %v629_v26 }
 0x210   :  { %v622_v25 = vpop.permute.xlu0 %621  ;;  %v1965_v48 = vpop.permute.xlu1 %689  ;;  %v669_v1 = vadd.f32 %v657_v34, %v595_v5  ;;  %v670_v47 = vadd.f32 %v658_v21, %v596_v9  ;;  %v868_v34 = vld [vmem:[#allocation2 + $0x348] sm:$0xff] }
 0x211   :  { %v626_v13 = vsel %vm623_vm6, %v1935_v60, %v622_v25  ;;  %v635_v30 = vsel %vm623_vm6, %v622_v25, %v1931_v46  ;;  %v720_v60 = vld [vmem:[#allocation2 + $0x288] sm:$0xff] }
 0x212   :  { %v659_v50 = vmul.f32 %v647_v12, %v626_v13  ;;  %v660_v24 = vmul.f32 %v648_v63, %v635_v30 }
 0x214   :  { %v684_v29 = vpop.permute.xlu0 %683  ;;  %v1983_v19 = vpop.permute.xlu1 %751  ;;  %v671_v16 = vadd.f32 %v659_v50, %v597_v38  ;;  %v672_v28 = vadd.f32 %v660_v24, %v598_v61  ;;  %v949_v24 = vld [vmem:[%s2067_s5] sm:$0xf] }
 0x215   :  { %v706_v44 = vsel %vm697_vm7, %v1949_v8, %v684_v29  ;;  %v703_v46 = vsel %vm697_vm7, %v684_v29, %v1965_v48 }
 0x216   :  { %v731_v52 = vmul.f32 %v719_v14, %v706_v44  ;;  %v732_v37 = vmul.f32 %v720_v60, %v703_v46 }
 0x218   :  { %v696_v62 = vpop.permute.xlu0 %695  ;;  %v764_v11 = vpop.permute.xlu1 %763  ;;  %v743_v42 = vadd.f32 %v731_v52, %v669_v1  ;;  %v744_v56 = vadd.f32 %v732_v37, %v670_v47  ;;  %v2111_v37 = vld [vmem:[#allocation8_spill] sm:$0xff] }
 0x219   :  { %v709_v54 = vsel %vm697_vm7, %v696_v62, %v1949_v8  ;;  %v700_v3 = vsel %vm697_vm7, %v1965_v48, %v696_v62  ;;  %v796_v48 = vld [vmem:[#allocation2 + $0x2f8] sm:$0xff] }
 0x21a   :  { %v734_v35 = vmul.f32 %v722_v22, %v709_v54  ;;  %v733_v29 = vmul.f32 %v721_v49, %v700_v3 }
 0x21c   :  { %v758_v25 = vpop.permute.xlu0 %757  ;;  %v832_v15 = vpop.permute.xlu1 %831  ;;  %v746_v7 = vadd.f32 %v734_v35, %v672_v28  ;;  %v745_v0 = vadd.f32 %v733_v29, %v671_v16  ;;  %v1171_v35 = vld [vmem:[%s2062_s0 + $0x8] sm:$0xff] }
 0x21d   :  { %v780_v8 = vsel %vm771_vm8, %v1983_v19, %v758_v25  ;;  %v777_v20 = vsel %vm771_vm8, %v758_v25, %v764_v11  ;;  %v854_v36 = vsel %vm845_vm9, %v1923_v10, %v832_v15 }
 0x21e   :  { %v805_v33 = vmul.f32 %v793_v23, %v780_v8  ;;  %v806_v31 = vmul.f32 %v794_v17, %v777_v20  ;;  %v879_v57 = vmul.f32 %v867_v55, %v854_v36  ;;  %v2110_v36 = vld [vmem:[#allocation9_spill] sm:$0xff] }
 0x220   :  { %v817_v59 = vadd.f32 %v805_v33, %v743_v42  ;;  %v770_v53 = vpop.permute.xlu0 %769  ;;  %v844_v45 = vpop.permute.xlu1 %843  ;;  %v818_v62 = vadd.f32 %v806_v31, %v744_v56  ;;  %v1172_v33 = vld [vmem:[%s2062_s0] sm:$0xff] }
 0x221   :  { %v774_v2 = vsel %vm771_vm8, %v764_v11, %v770_v53  ;;  %v783_v43 = vsel %vm771_vm8, %v770_v53, %v1983_v19  ;;  %v857_v40 = vsel %vm845_vm9, %v844_v45, %v1923_v10  ;;  %v2109_v10 = vld [vmem:[#allocation11_spill] sm:$0xff] }
 0x222   :  { %v807_v14 = vmul.f32 %v795_v58, %v774_v2  ;;  %v808_v44 = vmul.f32 %v796_v48, %v783_v43  ;;  %v891_v27 = vadd.f32 %v879_v57, %v817_v59  ;;  %v882_v4 = vmul.f32 %v870_v6, %v857_v40 }
 0x224   :  { %v820_v39 = vadd.f32 %v808_v44, %v746_v7  ;;  %v838_v26 = vpop.permute.xlu0 %837  ;;  %v819_v5 = vadd.f32 %v807_v14, %v745_v0  ;;  %v921_v30 = vadd.f32 %v2109_v10, %v891_v27 }
 0x225   :  { %v848_v19 = vsel %vm845_vm9, %v838_v26, %v844_v45  ;;  %v851_v11 = vsel %vm845_vm9, %v832_v15, %v838_v26 }
 0x226   :  { %v894_v12 = vadd.f32 %v882_v4, %v820_v39  ;;  %v880_v63 = vmul.f32 %v868_v34, %v851_v11  ;;  %v881_v13 = vmul.f32 %v869_v18, %v848_v19  ;;  %v933_v22 = vmax.f32 %v921_v30, 0.0 }
 0x228   :  { %v892_v52 = vadd.f32 %v880_v63, %v818_v62  ;;  %v893_v51 = vadd.f32 %v881_v13, %v819_v5  ;;  %v924_v32 = vadd.f32 %v2109_v10, %v894_v12  ;;  %v945_v60 = vmin.f32 %v933_v22, 6.0 }
 0x22a   :  { %v923_v9 = vadd.f32 %v2109_v10, %v893_v51  ;;  %v936_v21 = vmax.f32 %v924_v32, 0.0  ;;  %v922_v1 = vadd.f32 %v2109_v10, %v892_v52 }
 0x22c   :  { %v935_v54 = vmax.f32 %v923_v9, 0.0  ;;  %v948_v23 = vmin.f32 %v936_v21, 6.0  ;;  %v934_v41 = vmax.f32 %v922_v1, 0.0 }
 0x22e   :  { %1035 = vmatprep.subr.mxu1 %v948_v23  ;;  %v946_v38 = vmin.f32 %v934_v41, 6.0  ;;  %v947_v50 = vmin.f32 %v935_v54, 6.0 }
 0x230   :  { %964 = vmatprep.subr.mxu0 %v946_v38  ;;  %1036 = vmatpush1.msra.mxu1 %v947_v50 }
 0x231   :  { %965 = vmatpush1.msra.mxu0 %v945_v60  ;;  %1144 = vmatmul.mubr.msk.f32.vlgmr.msra.gmra.mrb[6].mxu1 %vm956_vm10, %v949_v24 }
 0x232   :  { %1143 = vmatmul.mubr.msk.f32.vlgmr.msra.gmra.mrb[6].mxu0 %vm956_vm10, %v949_v24 }
 0x235   :  { %v954_v46 = vpop.permute.xlu0 %953 }
 0x304   :  { %v1097_v25 = vpop.f32.mrb[6].mxu1 }
 0x305   :  { %v1098_v61 = vadd.f32 %v1097_v25, %v954_v46  ;;  %v1026_v42 = vpop.f32.mrb[6].mxu0  ;;  %v1099_v49 = vpop.f32.mrb[7].mxu1 }
 0x306   :  { %v1027_v3 = vadd.f32 %v1026_v42, %v954_v46  ;;  %v1100_v8 = vadd.f32 %v1099_v49, %v954_v46  ;;  %v1028_v15 = vpop.f32.mrb[7].mxu0 }
 0x307   :  { %v1106_v17 = vadd.f32 %v1171_v35, %v1098_v61  ;;  %v1029_v20 = vadd.f32 %v1028_v15, %v954_v46 }
 0x308   :  { %v1104_v55 = vadd.f32 %v1172_v33, %v1027_v3  ;;  %v1107_v47 = vadd.f32 %v1100_v8, %v2110_v36 }
 0x309   :  { %v1105_v58 = vadd.f32 %v1029_v20, %v2111_v37 }
 0x30a   :  { %v1113_v48 = vcombine.low %v1106_v17, %v1107_v47 }
 0x30b   :  { %v1112_v16 = vcombine.low %v1104_v55, %v1105_v58 }
 0x30c   :  { %1117 = vst [vmem:[#allocation5 + $0x8] sm:$0xff] %v1113_v48 }
 0x30d   :  { %1116 = vst [vmem:[#allocation5] sm:$0xff] %v1112_v16 }
 0x30e   :  { %1206 = shalt.err (!%p1203_p12)
}
 0x30f   :  { %s1207_s27 = scalar_lea.hbm %s2069_s7, 256 }
 0x310   :  { %p1208_p13 = scmp.ne.s32.totalorder %s2069_s7, %s1207_s27  ;;  %p1211_p0 = scmp.lt.u32.totalorder %s1207_s27, %s2069_s7 }
 0x312   :  { %p1213_p1 = pnand %p1211_p0, %p1208_p13 }
 0x314   :  { %1216 = shalt.err (!%p1213_p1)
}
 0x315   :  { %1127 = dma.vmem_to_hbm [thread:$0]  %s1125_s24, 256, %s2069_s7, [#allocation4]  }
 0x316   :  { %1219 = dma.done.wait [#allocation4], 256  }
 0x317   :  { %1220 = vsyncadd [#allocation4], 4294967040 }
 0x318   :  { %1131 = vsyncpa [#allocation3], 1 }
 0x319   :  { %1132 = vsyncpa [#allocation4], 1 }

</bundles_post_ra>
